<compile_context>
chip_gen: v5e
topology: v5e:2x2
jax: 0.10.0
libtpu: 0.0.40
codegen_flags: <defaults>
</compile_context>

<pallas_src>
import jax
import jax.numpy as jnp
from jax import lax
from jax.experimental import pallas as pl
from jax.experimental.pallas import tpu as pltpu

LANE = 128
COMPUTE_DTYPE = jnp.bfloat16   # MXU input + kernel output dtype; accum is f32


def _round_up(v, m):
    return (v + m - 1) // m * m


def _vmem_limit_bytes():
    """Generation-aware scoped-VMEM limit (48 MiB on 128-MiB parts, 32 on v7x)."""
    try:
        cap = pltpu.get_tpu_info().vmem_capacity_bytes
    except Exception:
        cap = 64 * 1024 * 1024          # conservative (v7x per-TC)
    return int(min(cap // 2, 48 * 1024 * 1024))


# ----------------------------- Pallas kernel -------------------------------

def bottleneck_kernel(x_ref, w1_ref, b1_ref, w2_ref, b2_ref, w3_ref, b3_ref,
                      out_ref, pad_ref):
    """One batch image per grid step (NHWC, channels padded to lane multiple).

    x_ref   : (1, H, W, Cin_p)          bf16 input block
    w1_ref  : (Cin_p, width_p)          bf16 1x1 conv #1 (BN1 scale folded)
    b1_ref  : (1, width_p)              f32  BN1 shift
    w2_ref  : (3, 3*width_p, width_p)   bf16 3x3 conv, [kx, (ky,ci), co], BN2 folded
    b2_ref  : (1, width_p)              f32  BN2 shift
    w3_ref  : (width_p, Cout_p)         bf16 1x1 conv #3 (BN3 scale folded)
    b3_ref  : (1, Cout_p)               f32  BN3 shift
    out_ref : (1, H, W, Cout_p)         bf16 output block
    pad_ref : (H+2, W, width_p)         bf16 VMEM scratch (ky zero-halo rows)
    """
    _, H, W, Cin = x_ref.shape
    width = w2_ref.shape[2]
    Cout = w3_ref.shape[1]
    HW = H * W

    # --- conv1 (1x1, scale folded into weights) + shift + ReLU ---------------
    t1 = jnp.dot(x_ref[...].reshape(HW, Cin), w1_ref[...],
                 preferred_element_type=jnp.float32)
    t1 = jnp.maximum(t1 + b1_ref[...], 0.0)

    # --- conv2 (3x3, stride 1, pad 1) -----------------------------------------
    # ky halo via zero rows in a bf16 scratch (all writes at aligned major-dim
    # offsets; the border is re-zeroed each step so it is megacore-safe).
    zrow = jnp.zeros((1, W, width), pad_ref.dtype)
    pad_ref[0:1, :, :] = zrow
    pad_ref[H + 1:H + 2, :, :] = zrow
    pad_ref[1:H + 1, :, :] = t1.reshape(H, W, width).astype(pad_ref.dtype)

    # Shared ky-im2col patch: (HW, 3*width) bf16, built once, used by 3 matmuls.
    pc = jnp.concatenate(
        [pad_ref[ky:ky + H, :, :] for ky in range(3)], axis=-1
    ).reshape(HW, 3 * width)

    # kx = 1 (center column) — no shift.
    acc = jnp.dot(pc, w2_ref[1], preferred_element_type=jnp.float32
                  ).reshape(H, W, width)

    zcol = jnp.zeros((H, 1, width), jnp.float32)

    # kx = 0: contribution to output column j comes from matmul column j-1.
    r0 = jnp.dot(pc, w2_ref[0], preferred_element_type=jnp.float32
                 ).reshape(H, W, width)
    acc = acc + jnp.concatenate([zcol, r0[:, :W - 1, :]], axis=1)

    # kx = 2: contribution to output column j comes from matmul column j+1.
    r2 = jnp.dot(pc, w2_ref[2], preferred_element_type=jnp.float32
                 ).reshape(H, W, width)
    acc = acc + jnp.concatenate([r2[:, 1:, :], zcol], axis=1)

    t2 = jnp.maximum(acc.reshape(HW, width) + b2_ref[...], 0.0)

    # --- conv3 (1x1) + shift + residual add + ReLU ----------------------------
    t3 = jnp.dot(t2.astype(w3_ref.dtype), w3_ref[...],
                 preferred_element_type=jnp.float32)
    t3 = t3 + b3_ref[...]
    # Re-read the input block for the residual (keeps x out of the live set
    # during the matmuls).
    resid = x_ref[...].reshape(HW, Cin).astype(jnp.float32)
    out = jnp.maximum(t3 + resid, 0.0)
    out_ref[...] = out.reshape(1, H, W, Cout).astype(out_ref.dtype)


# ------------------------------- Wrapper ------------------------------------

def bottleneck_forward(x_nchw, params):
    """x_nchw: (N, Cin, H, W) float32. Returns (N, Cout, H, W) float32."""
    (w1, s1, b1, w2, s2, b2, w3, s3, b3) = params
    N, Cin, H, W = x_nchw.shape
    width = w1.shape[1]
    Cout = w3.shape[1]
    assert Cout == Cin, "residual add requires Cout == Cin (downsample=None)"

    Cin_p = _round_up(Cin, LANE)
    width_p = _round_up(width, LANE)
    Cout_p = _round_up(Cout, LANE)

    # NCHW -> NHWC, zero-pad channels, bf16 for the MXU.  Fuses under jit.
    x_nhwc = jnp.transpose(x_nchw, (0, 2, 3, 1))
    x_p = jnp.pad(x_nhwc, ((0, 0), (0, 0), (0, 0), (0, Cin_p - Cin))
                  ).astype(COMPUTE_DTYPE)

    # Fold BN scales into the conv weights (f32) before bf16 quantization.
    w1s = w1 * s1.reshape(1, -1)
    w2s = w2 * s2.reshape(1, 1, 1, -1)
    w3s = w3 * s3.reshape(1, -1)

    w1_p = jnp.pad(w1s, ((0, Cin_p - Cin), (0, width_p - width))
                   ).astype(COMPUTE_DTYPE)
    # (ky, kx, ci, co) -> (kx, ky, ci, co) -> (3, 3*width_p, width_p)
    w2_p = jnp.pad(w2s, ((0, 0), (0, 0),
                         (0, width_p - width), (0, width_p - width)))
    w2_kx = jnp.transpose(w2_p, (1, 0, 2, 3)).reshape(
        3, 3 * width_p, width_p).astype(COMPUTE_DTYPE)
    w3_p = jnp.pad(w3s, ((0, width_p - width), (0, Cout_p - Cout))
                   ).astype(COMPUTE_DTYPE)

    b1_p = jnp.pad(b1, ((0, 0), (0, width_p - width))).astype(jnp.float32)
    b2_p = jnp.pad(b2, ((0, 0), (0, width_p - width))).astype(jnp.float32)
    b3_p = jnp.pad(b3, ((0, 0), (0, Cout_p - Cout))).astype(jnp.float32)

    def full(shape):
        return pl.BlockSpec(shape, lambda n, _s=shape: (0,) * len(_s))

    in_specs = [
        pl.BlockSpec((1, H, W, Cin_p), lambda n: (n, 0, 0, 0)),
        full((Cin_p, width_p)), full((1, width_p)),
        full((3, 3 * width_p, width_p)), full((1, width_p)),
        full((width_p, Cout_p)), full((1, Cout_p)),
    ]
    out_specs = pl.BlockSpec((1, H, W, Cout_p), lambda n: (n, 0, 0, 0))

    flops = 2 * N * H * W * (Cin_p * width_p + 9 * width_p * width_p
                             + width_p * Cout_p)
    bytes_accessed = (x_p.size * 2 + N * H * W * Cout_p * 2
                      + (w1_p.size + w2_kx.size + w3_p.size) * 2
                      + (b1_p.size + b2_p.size + b3_p.size) * 4)

    out_p = pl.pallas_call(
        bottleneck_kernel,
        grid=(N,),
        in_specs=in_specs,
        out_specs=out_specs,
        out_shape=jax.ShapeDtypeStruct((N, H, W, Cout_p), COMPUTE_DTYPE),
        scratch_shapes=[pltpu.VMEM((H + 2, W, width_p), COMPUTE_DTYPE)],
        compiler_params=pltpu.CompilerParams(
            dimension_semantics=("parallel",),
            vmem_limit_bytes=_vmem_limit_bytes()),
        cost_estimate=pl.CostEstimate(flops=flops, transcendentals=0,
                                      bytes_accessed=bytes_accessed),
    )(x_p, w1_p, b1_p, w2_kx, b2_p, w3_p, b3_p)

    out = out_p[..., :Cout].astype(jnp.float32)
    return jnp.transpose(out, (0, 3, 1, 2))  # NHWC -> NCHW


# ----------------------------- Pure-JAX reference ----------------------------
# Mirrors the kernel numerics: BN scale folded into f32 weights, bf16
# conv/matmul inputs, f32 accumulation, f32 shift/ReLU/residual, bf16 output.

def bottleneck_reference(x_nchw, params, compute_dtype=COMPUTE_DTYPE):
    (w1, s1, b1, w2, s2, b2, w3, s3, b3) = params
    x = jnp.transpose(x_nchw, (0, 2, 3, 1)).astype(compute_dtype)
    dn = lax.conv_dimension_numbers(x.shape, (1, 1, 1, 1),
                                    ("NHWC", "HWIO", "NHWC"))

    def conv(inp, ker, pad):
        return lax.conv_general_dilated(
            inp.astype(compute_dtype), ker.astype(compute_dtype),
            window_strides=(1, 1), padding=pad, dimension_numbers=dn,
            preferred_element_type=jnp.float32)

    Cin, width = w1.shape
    Cout = w3.shape[1]
    w1s = (w1 * s1.reshape(1, -1)).reshape(1, 1, Cin, width)
    w2s = w2 * s2.reshape(1, 1, 1, -1)
    w3s = (w3 * s3.reshape(1, -1)).reshape(1, 1, width, Cout)

    t = jnp.maximum(conv(x, w1s, "VALID") + b1.reshape(1, 1, 1, -1), 0.0)
    t = jnp.maximum(conv(t, w2s, [(1, 1), (1, 1)]) + b2.reshape(1, 1, 1, -1), 0.0)
    t = conv(t, w3s, "VALID") + b3.reshape(1, 1, 1, -1)
    t = jnp.maximum(t + x.astype(jnp.float32), 0.0)
    t = t.astype(compute_dtype).astype(jnp.float32)   # mirror bf16 output
    return jnp.transpose(t, (0, 3, 1, 2))


# ------------------------------ Param helpers --------------------------------

def make_params(key, inplanes, planes, base_width=64, groups=1, expansion=4):
    width = int(planes * (base_width / 64.0)) * groups
    cout = planes * expansion
    eps = 1e-5
    ks = jax.random.split(key, 15)

    def bn_fold(kg, kb, km, kv, c):
        gamma = jax.random.uniform(kg, (c,), jnp.float32, 0.5, 1.5)
        beta = 0.1 * jax.random.normal(kb, (c,), jnp.float32)
        mean = 0.1 * jax.random.normal(km, (c,), jnp.float32)
        var = jax.random.uniform(kv, (c,), jnp.float32, 0.5, 1.5)
        scale = gamma * lax.rsqrt(var + eps)
        shift = beta - mean * scale
        return scale.reshape(1, c), shift.reshape(1, c)

    w1 = 0.1 * jax.random.normal(ks[0], (inplanes, width), jnp.float32)
    w2 = 0.1 * jax.random.normal(ks[1], (3, 3, width, width), jnp.float32)
    w3 = 0.1 * jax.random.normal(ks[2], (width, cout), jnp.float32)
    s1, b1 = bn_fold(ks[3], ks[4], ks[5], ks[6], width)
    s2, b2 = bn_fold(ks[7], ks[8], ks[9], ks[10], width)
    s3, b3 = bn_fold(ks[11], ks[12], ks[13], ks[14], cout)
    return (w1, s1, b1, w2, s2, b2, w3, s3, b3)


# ---------------------------------- Main --------------------------------------

if __name__ == "__main__":
    # Small shapes: Bottleneck(inplanes=32, planes=8) -> width=8, out channels=32.
    N, inplanes, H, W = 2, 32, 16, 16
    planes = 8

    key = jax.random.PRNGKey(0)
    kx, kp = jax.random.split(key)
    x = jax.random.normal(kx, (N, inplanes, H, W), jnp.float32)
    params = make_params(kp, inplanes, planes)

    out = jax.jit(bottleneck_forward)(x, params)
    out = jax.block_until_ready(out)

    ref = bottleneck_reference(x, params)
    assert out.shape == (N, planes * 4, H, W)
    max_err = float(jnp.max(jnp.abs(out - ref)))
    assert jnp.allclose(out, ref, atol=2e-2, rtol=2e-2), max_err

    print("KERNEL_OK")
</pallas_src>

<mosaic_0001>
module attributes {stable_mosaic.version = 11 : i64} {
  func.func @bottleneck_kernel(%arg0: i32, %arg1: memref<1x16x16x128xbf16, #tpu.memory_space<vmem>>, %arg2: memref<128x128xbf16, #tpu.memory_space<vmem>>, %arg3: memref<1x128xf32, #tpu.memory_space<vmem>>, %arg4: memref<3x384x128xbf16, #tpu.memory_space<vmem>>, %arg5: memref<1x128xf32, #tpu.memory_space<vmem>>, %arg6: memref<128x128xbf16, #tpu.memory_space<vmem>>, %arg7: memref<1x128xf32, #tpu.memory_space<vmem>>, %arg8: memref<1x16x16x128xbf16, #tpu.memory_space<vmem>>, %arg9: memref<18x16x128xbf16, #tpu.memory_space<vmem>>) attributes {dimension_semantics = [#tpu.dimension_semantics<parallel>], iteration_bounds = array<i64: 2>, scalar_prefetch = 0 : i64, scratch_operands = 1 : i64, tpu.core_type = #tpu.core_type<tc>, window_params = [{transform_indices = @transform_0, window_bounds = array<i64: 1, 16, 16, 128>}, {pipeline_mode = #tpu.pipeline_mode<synchronous>, transform_indices = @transform_1, window_bounds = array<i64: 128, 128>}, {pipeline_mode = #tpu.pipeline_mode<synchronous>, transform_indices = @transform_2, window_bounds = array<i64: 1, 128>}, {pipeline_mode = #tpu.pipeline_mode<synchronous>, transform_indices = @transform_3, window_bounds = array<i64: 3, 384, 128>}, {pipeline_mode = #tpu.pipeline_mode<synchronous>, transform_indices = @transform_4, window_bounds = array<i64: 1, 128>}, {pipeline_mode = #tpu.pipeline_mode<synchronous>, transform_indices = @transform_5, window_bounds = array<i64: 128, 128>}, {pipeline_mode = #tpu.pipeline_mode<synchronous>, transform_indices = @transform_6, window_bounds = array<i64: 1, 128>}, {transform_indices = @transform_7, window_bounds = array<i64: 1, 16, 16, 128>}]} {
    %c0 = arith.constant 0 : index
    %c0_0 = arith.constant 0 : index
    %c0_1 = arith.constant 0 : index
    %c0_2 = arith.constant 0 : index
    %0 = vector.load %arg1[%c0, %c0_0, %c0_1, %c0_2] : memref<1x16x16x128xbf16, #tpu.memory_space<vmem>>, vector<1x16x16x128xbf16>
    %1 = vector.shape_cast %0 : vector<1x16x16x128xbf16> to vector<256x128xbf16>
    %c0_3 = arith.constant 0 : index
    %c0_4 = arith.constant 0 : index
    %2 = vector.load %arg2[%c0_3, %c0_4] : memref<128x128xbf16, #tpu.memory_space<vmem>>, vector<128x128xbf16>
    %cst = arith.constant dense<0.000000e+00> : vector<256x128xf32>
    %3 = tpu.matmul %1, %2, %cst {dimension_numbers = #tpu.dot_dimension_numbers<[1], [0], [0], [1], [0, 0, 1, 1], [], []>} : vector<256x128xbf16>, vector<128x128xbf16>, vector<256x128xf32> -> vector<256x128xf32>
    %c0_5 = arith.constant 0 : index
    %c0_6 = arith.constant 0 : index
    %4 = vector.load %arg3[%c0_5, %c0_6] : memref<1x128xf32, #tpu.memory_space<vmem>>, vector<1x128xf32>
    %5 = vector.broadcast %4 : vector<1x128xf32> to vector<256x128xf32>
    %6 = arith.addf %3, %5 : vector<256x128xf32>
    %cst_7 = arith.constant 0.000000e+00 : f32
    %7 = vector.broadcast %cst_7 : f32 to vector<256x128xf32>
    %8 = arith.maximumf %6, %7 : vector<256x128xf32>
    %cst_8 = arith.constant 0.000000e+00 : bf16
    %9 = vector.broadcast %cst_8 : bf16 to vector<1x16x128xbf16>
    %c0_9 = arith.constant 0 : index
    %c0_10 = arith.constant 0 : index
    %c0_11 = arith.constant 0 : index
    %10 = vector.load %arg9[%c0_9, %c0_10, %c0_11] : memref<18x16x128xbf16, #tpu.memory_space<vmem>>, vector<1x16x128xbf16>
    tpu.vector_store %arg9[%c0_9, %c0_10, %c0_11], %9 {strides = array<i32>} : memref<18x16x128xbf16, #tpu.memory_space<vmem>>, vector<1x16x128xbf16>,
    %c17 = arith.constant 17 : index
    %c0_12 = arith.constant 0 : index
    %c0_13 = arith.constant 0 : index
    %11 = vector.load %arg9[%c17, %c0_12, %c0_13] : memref<18x16x128xbf16, #tpu.memory_space<vmem>>, vector<1x16x128xbf16>
    tpu.vector_store %arg9[%c17, %c0_12, %c0_13], %9 {strides = array<i32>} : memref<18x16x128xbf16, #tpu.memory_space<vmem>>, vector<1x16x128xbf16>,
    %12 = vector.shape_cast %8 : vector<256x128xf32> to vector<16x16x128xf32>
    %13 = arith.truncf %12 : vector<16x16x128xf32> to vector<16x16x128xbf16>
    %c1 = arith.constant 1 : index
    %c0_14 = arith.constant 0 : index
    %c0_15 = arith.constant 0 : index
    %14 = vector.load %arg9[%c1, %c0_14, %c0_15] : memref<18x16x128xbf16, #tpu.memory_space<vmem>>, vector<16x16x128xbf16>
    tpu.vector_store %arg9[%c1, %c0_14, %c0_15], %13 {strides = array<i32>} : memref<18x16x128xbf16, #tpu.memory_space<vmem>>, vector<16x16x128xbf16>,
    %c0_16 = arith.constant 0 : index
    %c0_17 = arith.constant 0 : index
    %c0_18 = arith.constant 0 : index
    %15 = vector.load %arg9[%c0_16, %c0_17, %c0_18] : memref<18x16x128xbf16, #tpu.memory_space<vmem>>, vector<16x16x128xbf16>
    %c1_19 = arith.constant 1 : index
    %c0_20 = arith.constant 0 : index
    %c0_21 = arith.constant 0 : index
    %16 = vector.load %arg9[%c1_19, %c0_20, %c0_21] : memref<18x16x128xbf16, #tpu.memory_space<vmem>>, vector<16x16x128xbf16>
    %c2 = arith.constant 2 : index
    %c0_22 = arith.constant 0 : index
    %c0_23 = arith.constant 0 : index
    %17 = vector.load %arg9[%c2, %c0_22, %c0_23] : memref<18x16x128xbf16, #tpu.memory_space<vmem>>, vector<16x16x128xbf16>
    %18 = tpu.concatenate %15, %16, %17 in 2 : vector<16x16x128xbf16>, vector<16x16x128xbf16>, vector<16x16x128xbf16> -> vector<16x16x384xbf16>
    %19 = vector.shape_cast %18 : vector<16x16x384xbf16> to vector<256x384xbf16>
    %c1_24 = arith.constant 1 : index
    %c0_25 = arith.constant 0 : index
    %c0_26 = arith.constant 0 : index
    %20 = vector.load %arg4[%c1_24, %c0_25, %c0_26] : memref<3x384x128xbf16, #tpu.memory_space<vmem>>, vector<1x384x128xbf16>
    %21 = vector.shape_cast %20 : vector<1x384x128xbf16> to vector<384x128xbf16>
    %cst_27 = arith.constant dense<0.000000e+00> : vector<256x128xf32>
    %22 = tpu.matmul %19, %21, %cst_27 {dimension_numbers = #tpu.dot_dimension_numbers<[1], [0], [0], [1], [0, 0, 1, 1], [], []>} : vector<256x384xbf16>, vector<384x128xbf16>, vector<256x128xf32> -> vector<256x128xf32>
    %23 = vector.shape_cast %22 : vector<256x128xf32> to vector<16x16x128xf32>
    %cst_28 = arith.constant 0.000000e+00 : f32
    %24 = vector.broadcast %cst_28 : f32 to vector<16x1x128xf32>
    %c0_29 = arith.constant 0 : index
    %c0_30 = arith.constant 0 : index
    %c0_31 = arith.constant 0 : index
    %25 = vector.load %arg4[%c0_29, %c0_30, %c0_31] : memref<3x384x128xbf16, #tpu.memory_space<vmem>>, vector<1x384x128xbf16>
    %26 = vector.shape_cast %25 : vector<1x384x128xbf16> to vector<384x128xbf16>
    %cst_32 = arith.constant dense<0.000000e+00> : vector<256x128xf32>
    %27 = tpu.matmul %19, %26, %cst_32 {dimension_numbers = #tpu.dot_dimension_numbers<[1], [0], [0], [1], [0, 0, 1, 1], [], []>} : vector<256x384xbf16>, vector<384x128xbf16>, vector<256x128xf32> -> vector<256x128xf32>
    %28 = vector.shape_cast %27 : vector<256x128xf32> to vector<16x16x128xf32>
    %29 = vector.extract_strided_slice %28 {offsets = [0, 0, 0], sizes = [16, 15, 128], strides = [1, 1, 1]} : vector<16x16x128xf32> to vector<16x15x128xf32>
    %30 = tpu.concatenate %24, %29 in 1 : vector<16x1x128xf32>, vector<16x15x128xf32> -> vector<16x16x128xf32>
    %31 = arith.addf %23, %30 : vector<16x16x128xf32>
    %c2_33 = arith.constant 2 : index
    %c0_34 = arith.constant 0 : index
    %c0_35 = arith.constant 0 : index
    %32 = vector.load %arg4[%c2_33, %c0_34, %c0_35] : memref<3x384x128xbf16, #tpu.memory_space<vmem>>, vector<1x384x128xbf16>
    %33 = vector.shape_cast %32 : vector<1x384x128xbf16> to vector<384x128xbf16>
    %cst_36 = arith.constant dense<0.000000e+00> : vector<256x128xf32>
    %34 = tpu.matmul %19, %33, %cst_36 {dimension_numbers = #tpu.dot_dimension_numbers<[1], [0], [0], [1], [0, 0, 1, 1], [], []>} : vector<256x384xbf16>, vector<384x128xbf16>, vector<256x128xf32> -> vector<256x128xf32>
    %35 = vector.shape_cast %34 : vector<256x128xf32> to vector<16x16x128xf32>
    %36 = vector.extract_strided_slice %35 {offsets = [0, 1, 0], sizes = [16, 15, 128], strides = [1, 1, 1]} : vector<16x16x128xf32> to vector<16x15x128xf32>
    %37 = tpu.concatenate %36, %24 in 1 : vector<16x15x128xf32>, vector<16x1x128xf32> -> vector<16x16x128xf32>
    %38 = arith.addf %31, %37 : vector<16x16x128xf32>
    %39 = vector.shape_cast %38 : vector<16x16x128xf32> to vector<256x128xf32>
    %c0_37 = arith.constant 0 : index
    %c0_38 = arith.constant 0 : index
    %40 = vector.load %arg5[%c0_37, %c0_38] : memref<1x128xf32, #tpu.memory_space<vmem>>, vector<1x128xf32>
    %41 = vector.broadcast %40 : vector<1x128xf32> to vector<256x128xf32>
    %42 = arith.addf %39, %41 : vector<256x128xf32>
    %cst_39 = arith.constant 0.000000e+00 : f32
    %43 = vector.broadcast %cst_39 : f32 to vector<256x128xf32>
    %44 = arith.maximumf %42, %43 : vector<256x128xf32>
    %45 = arith.truncf %44 : vector<256x128xf32> to vector<256x128xbf16>
    %c0_40 = arith.constant 0 : index
    %c0_41 = arith.constant 0 : index
    %46 = vector.load %arg6[%c0_40, %c0_41] : memref<128x128xbf16, #tpu.memory_space<vmem>>, vector<128x128xbf16>
    %cst_42 = arith.constant dense<0.000000e+00> : vector<256x128xf32>
    %47 = tpu.matmul %45, %46, %cst_42 {dimension_numbers = #tpu.dot_dimension_numbers<[1], [0], [0], [1], [0, 0, 1, 1], [], []>} : vector<256x128xbf16>, vector<128x128xbf16>, vector<256x128xf32> -> vector<256x128xf32>
    %c0_43 = arith.constant 0 : index
    %c0_44 = arith.constant 0 : index
    %48 = vector.load %arg7[%c0_43, %c0_44] : memref<1x128xf32, #tpu.memory_space<vmem>>, vector<1x128xf32>
    %49 = vector.broadcast %48 : vector<1x128xf32> to vector<256x128xf32>
    %50 = arith.addf %47, %49 : vector<256x128xf32>
    %c0_45 = arith.constant 0 : index
    %c0_46 = arith.constant 0 : index
    %c0_47 = arith.constant 0 : index
    %c0_48 = arith.constant 0 : index
    %51 = vector.load %arg1[%c0_45, %c0_46, %c0_47, %c0_48] : memref<1x16x16x128xbf16, #tpu.memory_space<vmem>>, vector<1x16x16x128xbf16>
    %52 = vector.shape_cast %51 : vector<1x16x16x128xbf16> to vector<256x128xbf16>
    %53 = arith.extf %52 : vector<256x128xbf16> to vector<256x128xf32>
    %54 = arith.addf %50, %53 : vector<256x128xf32>
    %cst_49 = arith.constant 0.000000e+00 : f32
    %55 = vector.broadcast %cst_49 : f32 to vector<256x128xf32>
    %56 = arith.maximumf %54, %55 : vector<256x128xf32>
    %57 = vector.shape_cast %56 : vector<256x128xf32> to vector<1x16x16x128xf32>
    %58 = arith.truncf %57 : vector<1x16x16x128xf32> to vector<1x16x16x128xbf16>
    %c0_50 = arith.constant 0 : index
    %c0_51 = arith.constant 0 : index
    %c0_52 = arith.constant 0 : index
    %c0_53 = arith.constant 0 : index
    %59 = vector.load %arg8[%c0_50, %c0_51, %c0_52, %c0_53] : memref<1x16x16x128xbf16, #tpu.memory_space<vmem>>, vector<1x16x16x128xbf16>
    tpu.vector_store %arg8[%c0_50, %c0_51, %c0_52, %c0_53], %58 {strides = array<i32>} : memref<1x16x16x128xbf16, #tpu.memory_space<vmem>>, vector<1x16x16x128xbf16>,
    return
  }
  func.func @transform_0(%arg0: i32) -> (i32, i32, i32, i32) {
    %c0_i32 = arith.constant 0 : i32
    %c0_i32_0 = arith.constant 0 : i32
    %c0_i32_1 = arith.constant 0 : i32
    %c0_i32_2 = arith.constant 0 : i32
    return %arg0, %c0_i32, %c0_i32_0, %c0_i32_1 : i32, i32, i32, i32
  }
  func.func @transform_1(%arg0: i32) -> (i32, i32) {
    %c0_i32 = arith.constant 0 : i32
    %c0_i32_0 = arith.constant 0 : i32
    %c0_i32_1 = arith.constant 0 : i32
    return %c0_i32, %c0_i32_0 : i32, i32
  }
  func.func @transform_2(%arg0: i32) -> (i32, i32) {
    %c0_i32 = arith.constant 0 : i32
    %c0_i32_0 = arith.constant 0 : i32
    %c0_i32_1 = arith.constant 0 : i32
    return %c0_i32, %c0_i32_0 : i32, i32
  }
  func.func @transform_3(%arg0: i32) -> (i32, i32, i32) {
    %c0_i32 = arith.constant 0 : i32
    %c0_i32_0 = arith.constant 0 : i32
    %c0_i32_1 = arith.constant 0 : i32
    %c0_i32_2 = arith.constant 0 : i32
    return %c0_i32, %c0_i32_0, %c0_i32_1 : i32, i32, i32
  }
  func.func @transform_4(%arg0: i32) -> (i32, i32) {
    %c0_i32 = arith.constant 0 : i32
    %c0_i32_0 = arith.constant 0 : i32
    %c0_i32_1 = arith.constant 0 : i32
    return %c0_i32, %c0_i32_0 : i32, i32
  }
  func.func @transform_5(%arg0: i32) -> (i32, i32) {
    %c0_i32 = arith.constant 0 : i32
    %c0_i32_0 = arith.constant 0 : i32
    %c0_i32_1 = arith.constant 0 : i32
    return %c0_i32, %c0_i32_0 : i32, i32
  }
  func.func @transform_6(%arg0: i32) -> (i32, i32) {
    %c0_i32 = arith.constant 0 : i32
    %c0_i32_0 = arith.constant 0 : i32
    %c0_i32_1 = arith.constant 0 : i32
    return %c0_i32, %c0_i32_0 : i32, i32
  }
  func.func @transform_7(%arg0: i32) -> (i32, i32, i32, i32) {
    %c0_i32 = arith.constant 0 : i32
    %c0_i32_0 = arith.constant 0 : i32
    %c0_i32_1 = arith.constant 0 : i32
    %c0_i32_2 = arith.constant 0 : i32
    return %arg0, %c0_i32, %c0_i32_0, %c0_i32_1 : i32, i32, i32, i32
  }
}

</mosaic_0001>

<bundles_post_ra>
// kernel: bottleneck_forward.1
= control target key start
LH: loop header
LB: loop body
LE: loop exit
PB: predicated region body
PF: predicated region fallthrough
CT: control target
= control target key end

     0   :  { %s4480_s24 = smov 0   ;;  %s5770_s0 = inlined_call_operand.vmem [shape: bf16[2,16,16,128], index: 0, kind: input, shape index: {}]   ;;  %s5771_s1 = inlined_call_operand.vmem [shape: bf16[128,128], index: 1, kind: input, shape index: {}]   ;;  %s5772_s2 = inlined_call_operand.vmem [shape: f32[1,128], index: 2, kind: input, shape index: {}]   ;;  %s5773_s3 = inlined_call_operand.vmem [shape: bf16[3,384,128], index: 3, kind: input, shape index: {}]   ;;  %s5774_s4 = inlined_call_operand.vmem [shape: f32[1,128], index: 4, kind: input, shape index: {}]   ;;  %s5775_s5 = inlined_call_operand.vmem [shape: bf16[128,128], index: 5, kind: input, shape index: {}]   ;;  %s5776_s6 = inlined_call_operand.vmem [shape: f32[1,128], index: 6, kind: input, shape index: {}]   ;;  %s5777_s7 = inlined_call_operand.vmem [shape: bf16[2,16,16,128], index: 7, kind: output, shape index: {}]  }
   0x1 LB: > { %s3241_s25 = sadd.s32 4294967295, %s4437_s24   ;;  %p3245_p0 = scmp.ge.s32.totalorder %s4437_s24, 1  ;;  %s4437_s24 = sphi %s4480_s24, %s17_s24  }
   0x2   : > { %p237_p1 = scmp.lt.s32.totalorder %s4437_s24, 3 }
   0x4   : > { %p238_p2 = pnand %p3245_p0, %p237_p1 }
   0x6   : > { %241 = sbr.rel (%p238_p2) target bundleno = 1295 (0x50f), region = 48 }
   0xb   : > { %v3981_v0 = vld [vmem:[%s5771_s1 + $0x38] sm:$0xff]  ;;  %v3980_v1 = vld [vmem:[%s5771_s1 + $0x30] sm:$0xff]  ;;  %v3979_v2 = vld [vmem:[%s5771_s1 + $0x28] sm:$0xff]  ;;  %p269_p3 = scmp.lt.s32.totalorder %s3241_s25, 1  ;;  %v4439_v25 = vmov 0   ;;  %vm2003_vm0 = vcmask 1040384  }
   0xc   : > { %476 = vmatpush.bf16.msra.mxu0 %v3981_v0  ;;  %4379 = vmatpush.bf16.msra.mxu3 %v3981_v0  ;;  %v3978_v3 = vld [vmem:[%s5771_s1 + $0x20] sm:$0xff]  ;;  %v3977_v4 = vld [vmem:[%s5771_s1 + $0x18] sm:$0xff]  ;;  %v3976_v5 = vld [vmem:[%s5771_s1 + $0x10] sm:$0xff]  ;;  %597 = vst [vmem:[#allocation2] sm:$0xf] %v4439_v25  ;;  %vm2624_vm1 = vcmask 1046528  }
   0xd   : > { %s5885_s25 = smov (!%p269_p3, %s3241_s25), 1  ;;  %v3975_v6 = vld [vmem:[%s5771_s1 + $0x8] sm:$0xff]  ;;  %v3974_v7 = vld [vmem:[%s5771_s1] sm:$0xff]  ;;  %v4037_v13 = vld [vmem:[%s5773_s3 + $0xf8] sm:$0xff]  ;;  %598 = vst [vmem:[#allocation2 + $0x4] sm:$0xf] %v4439_v25 }
   0xe   : > { %s3956_s17 = sshll.u32 %s5885_s25, 7  ;;  %1245 = vmatpush.bf16.msra.mxu1 %v4037_v13  ;;  %v4036_v14 = vld [vmem:[%s5773_s3 + $0xf0] sm:$0xff]  ;;  %v4035_v15 = vld [vmem:[%s5773_s3 + $0xe8] sm:$0xff]  ;;  %v4034_v17 = vld [vmem:[%s5773_s3 + $0xe0] sm:$0xff]  ;;  %600 = vst [vmem:[#allocation2 + $0x88] sm:$0xf] %v4439_v25 }
   0xf   : > { %s4520_s22 = scalar_lea.vmem %s5770_s0, %s3956_s17  ;;  %v4543_v18 = vld [vmem:[%s5773_s3 + $0x138] sm:$0xff]  ;;  %v4552_v20 = vld [vmem:[%s5773_s3 + $0x130] sm:$0xff]  ;;  %v4031_v23 = vld [vmem:[%s5773_s3 + $0xc8] sm:$0xff]  ;;  %601 = vst [vmem:[#allocation2 + $0x8c] sm:$0xf] %v4439_v25  ;;  %s5668_s19 = scalar_lea.vmem %s5777_s7, %s3956_s17 }
  0x10   : > { %477 = vmatpush.bf16.msra.mxu0 %v3980_v1  ;;  %4380 = vmatpush.bf16.msra.mxu3 %v3980_v1  ;;  %v3958_v8 = vld [vmem:[%s4520_s22] sm:$0xff]  ;;  %v3959_v9 = vld [vmem:[%s4520_s22 + $0x8] sm:$0xff]  ;;  %v3960_v10 = vld [vmem:[%s4520_s22 + $0x10] sm:$0xff] }
  0x11   : > { %v3961_v11 = vld [vmem:[%s4520_s22 + $0x18] sm:$0xff]  ;;  %v3962_v12 = vld [vmem:[%s4520_s22 + $0x20] sm:$0xff]  ;;  %v3963_v16 = vld [vmem:[%s4520_s22 + $0x28] sm:$0xff]  ;;  %1334 = vmatpush.bf16.msra.mxu2 %v4543_v18 }
  0x12   : > { %1246 = vmatpush.bf16.msra.mxu1 %v4036_v14  ;;  %v4033_v19 = vld [vmem:[%s5773_s3 + $0xd8] sm:$0xff]  ;;  %v4032_v21 = vld [vmem:[%s5773_s3 + $0xd0] sm:$0xff]  ;;  %v4565_v24 = vld [vmem:[%s5773_s3 + $0x128] sm:$0xff] }
  0x13   : > { %v3964_v22 = vld [vmem:[%s4520_s22 + $0x30] sm:$0xff]  ;;  %v4030_v26 = vld [vmem:[%s5773_s3 + $0xc0] sm:$0xff]  ;;  %v4582_v29 = vld [vmem:[%s5773_s3 + $0x118] sm:$0xff] }
  0x14   : > { %478 = vmatpush.bf16.msra.mxu0 %v3979_v2  ;;  %4381 = vmatpush.bf16.msra.mxu3 %v3979_v2  ;;  %v4574_v27 = vld [vmem:[%s5773_s3 + $0x120] sm:$0xff]  ;;  %v4589_v30 = vld [vmem:[%s5773_s3 + $0x110] sm:$0xff]  ;;  %v3965_v31 = vld [vmem:[%s4520_s22 + $0x38] sm:$0xff] }
  0x15   : > { %1335 = vmatpush.bf16.msra.mxu2 %v4552_v20  ;;  %v4577_v28 = vld [vmem:[#allocation2] sm:$0xff]  ;;  %v4596_v32 = vld [vmem:[%s5773_s3 + $0x108] sm:$0xff]  ;;  %v4061_v36 = vld [vmem:[%s5773_s3 + $0x38] sm:$0xff] }
  0x16   : > { %1247 = vmatpush.bf16.msra.mxu1 %v4035_v15  ;;  %v4602_v33 = vld [vmem:[%s5773_s3 + $0x100] sm:$0xff]  ;;  %v4060_v38 = vld [vmem:[%s5773_s3 + $0x30] sm:$0xff]  ;;  %v4059_v42 = vld [vmem:[%s5773_s3 + $0x28] sm:$0xff] }
  0x17   : > { %v3966_v34 = vld [vmem:[%s4520_s22 + $0x40] sm:$0xff]  ;;  %v3967_v47 = vld [vmem:[%s4520_s22 + $0x48] sm:$0xff]  ;;  %v4057_v49 = vld [vmem:[%s5773_s3 + $0x18] sm:$0xff] }
  0x18   : > { %479 = vmatpush.bf16.msra.mxu0 %v3978_v3  ;;  %4382 = vmatpush.bf16.msra.mxu3 %v3978_v3  ;;  %v4612_v37 = vld [vmem:[%s5772_s2] ss:$0 sm:$0xff]  ;;  %v4056_v53 = vld [vmem:[%s5773_s3 + $0x10] sm:$0xff]  ;;  %v4055_v57 = vld [vmem:[%s5773_s3 + $0x8] sm:$0xff] }
  0x19   : > { %1336 = vmatpush.bf16.msra.mxu2 %v4565_v24  ;;  %v4058_v46 = vld [vmem:[%s5773_s3 + $0x20] sm:$0xff]  ;;  %v3968_v62 = vld [vmem:[%s4520_s22 + $0x50] sm:$0xff]  ;;  %v3971_v0 = vld [vmem:[%s4520_s22 + $0x68] sm:$0xff] }
  0x1a   : > { %1248 = vmatpush.bf16.msra.mxu1 %v4034_v17  ;;  %v3970_v50 = vld [vmem:[%s4520_s22 + $0x60] sm:$0xff] }
  0x1b   : > { %v4054_v61 = vld [vmem:[%s5773_s3] sm:$0xff] }
  0x1c   : > { %480 = vmatpush.bf16.msra.mxu0 %v3977_v4  ;;  %4383 = vmatpush.bf16.msra.mxu3 %v3977_v4 }
  0x1d   : > { %1337 = vmatpush.bf16.msra.mxu2 %v4574_v27 }
  0x1e   : > { %1249 = vmatpush.bf16.msra.mxu1 %v4033_v19 }
  0x20   : > { %481 = vmatpush.bf16.msra.mxu0 %v3976_v5  ;;  %4384 = vmatpush.bf16.msra.mxu3 %v3976_v5 }
  0x21   : > { %1338 = vmatpush.bf16.msra.mxu2 %v4582_v29 }
  0x22   : > { %1250 = vmatpush.bf16.msra.mxu1 %v4032_v21 }
  0x24   : > { %482 = vmatpush.bf16.msra.mxu0 %v3975_v6  ;;  %4385 = vmatpush.bf16.msra.mxu3 %v3975_v6 }
  0x25   : > { %1339 = vmatpush.bf16.msra.mxu2 %v4589_v30 }
  0x26   : > { %1251 = vmatpush.bf16.msra.mxu1 %v4031_v23 }
  0x28   : > { %483 = vmatpush.bf16.msra.mxu0 %v3974_v7  ;;  %4386 = vmatpush.bf16.msra.mxu3 %v3974_v7 }
  0x29   : > { %1340 = vmatpush.bf16.msra.mxu2 %v4596_v32 }
  0x2a   : > { %1252 = vmatpush.bf16.msra.mxu1 %v4030_v26 }
  0x2b   : > { %484 = vmatmul.bf16.vlgmr.msra.gmra.mxu0 %v3958_v8  ;;  %544 = vmatmul.bf16.vlgmr.msra.gmra.mxu3 %v3970_v50  ;;  %v3973_v50 = vld [vmem:[%s4520_s22 + $0x78] sm:$0xff] }
  0x2c   : > { %4387 = vmatpush.bf16.msrb.mxu3 %v4037_v13  ;;  %1704 = vmatpush.bf16.msrb.mxu0 %v4061_v36 }
  0x2d   : > { %1253 = vmatmul.bf16.vlgmr.msra.gmra.mxu1 %v4577_v28  ;;  %1341 = vmatpush.bf16.msra.mxu2 %v4602_v33 }
  0x30   : > { %4388 = vmatpush.bf16.msrb.mxu3 %v4036_v14  ;;  %1705 = vmatpush.bf16.msrb.mxu0 %v4060_v38 }
  0x34   : > { %4389 = vmatpush.bf16.msrb.mxu3 %v4035_v15  ;;  %1706 = vmatpush.bf16.msrb.mxu0 %v4059_v42 }
  0x38   : > { %4390 = vmatpush.bf16.msrb.mxu3 %v4034_v17  ;;  %1707 = vmatpush.bf16.msrb.mxu0 %v4058_v46 }
  0x3b   : > { %489 = vmatmul.bf16.gmra.mxu0 %v3959_v9  ;;  %549 = vmatmul.bf16.gmra.mxu3 %v3971_v0  ;;  %v3969_v9 = vld [vmem:[%s4520_s22 + $0x58] sm:$0xff] }
  0x3c   : > { %4391 = vmatpush.bf16.msrb.mxu3 %v4033_v19  ;;  %1708 = vmatpush.bf16.msrb.mxu0 %v4057_v49  ;;  %v4069_v49 = vld [vmem:[%s5773_s3 + $0x78] sm:$0xff] }
  0x3d   : > { %1793 = vmatpush.bf16.msrb.mxu1 %v4069_v49 }
  0x40   : > { %4392 = vmatpush.bf16.msrb.mxu3 %v4032_v21  ;;  %1709 = vmatpush.bf16.msrb.mxu0 %v4056_v53 }
  0x44   : > { %4393 = vmatpush.bf16.msrb.mxu3 %v4031_v23  ;;  %1710 = vmatpush.bf16.msrb.mxu0 %v4055_v57 }
  0x48   : > { %4394 = vmatpush.bf16.msrb.mxu3 %v4030_v26  ;;  %1711 = vmatpush.bf16.msrb.mxu0 %v4054_v61 }
  0x4b   : > { %494 = vmatmul.bf16.gmra.mxu0 %v3960_v10 }
  0x4c   : > { %4395 = vmatpush.bf16.msra.mxu3 %v4543_v18 }
  0x50   : > { %4396 = vmatpush.bf16.msra.mxu3 %v4552_v20 }
  0x54   : > { %4397 = vmatpush.bf16.msra.mxu3 %v4565_v24 }
  0x58   : > { %4398 = vmatpush.bf16.msra.mxu3 %v4574_v27 }
  0x5b   : > { %499 = vmatmul.bf16.gmra.mxu0 %v3961_v11  ;;  %v3972_v11 = vld [vmem:[%s4520_s22 + $0x70] sm:$0xff] }
  0x5c   : > { %4399 = vmatpush.bf16.msra.mxu3 %v4582_v29 }
  0x5d   : > { %554 = vmatmul.bf16.gmra.mxu3 %v3972_v11  ;;  %v4066_v11 = vld [vmem:[%s5773_s3 + $0x60] sm:$0xff] }
  0x60   : > { %4400 = vmatpush.bf16.msra.mxu3 %v4589_v30 }
  0x64   : > { %4401 = vmatpush.bf16.msra.mxu3 %v4596_v32 }
  0x68   : > { %4402 = vmatpush.bf16.msra.mxu3 %v4602_v33 }
  0x6b   : > { %504 = vmatmul.bf16.gmra.mxu0 %v3962_v12 }
  0x6d   : > { %559 = vmatmul.bf16.gmra.mxu3 %v3973_v50 }
  0x7b   : > { %509 = vmatmul.bf16.gmra.mxu0 %v3963_v16 }
  0x8b   : > { %514 = vmatmul.bf16.gmra.mxu0 %v3964_v22 }
  0x9b   : > { %519 = vmatmul.bf16.gmra.mxu0 %v3965_v31 }
  0xa8   : > { %v485_v35 = vpop.f32.mrf.mxu0 }
  0xa9   : > { %v486_v39 = vadd.f32 %v4612_v37, %v485_v35 }
  0xaa   : > { %v1254_v61 = vpop.f32.mrf.mxu1 }
  0xab   : > { %524 = vmatmul.bf16.gmra.mxu0 %v3966_v34  ;;  %v565_v43 = vmax.f32 %v486_v39, 0.0 }
  0xb0   : > { %v487_v40 = vpop.f32.mrf.mxu0 }
  0xb1   : > { %v488_v41 = vadd.f32 %v4612_v37, %v487_v40 }
  0xb3   : > { %v566_v44 = vmax.f32 %v488_v41, 0.0 }
  0xb5   : > { %v4113_v45 = vpack.c.bf16 %v566_v44, %v565_v43 }
  0xb7   : > { %4114 = vst [vmem:[#allocation2 + $0x8] sm:$0xff] %v4113_v45  }
  0xb8   : > { %v490_v48 = vpop.f32.mrf.mxu0 }
  0xb9   : > { %v491_v54 = vadd.f32 %v4612_v37, %v490_v48 }
  0xbb   : > { %529 = vmatmul.bf16.gmra.mxu0 %v3967_v47  ;;  %v567_v58 = vmax.f32 %v491_v54, 0.0 }
  0xbe   : > { %v4630_v51 = vld [vmem:[#allocation2 + $0x8] sm:$0xff] }
  0xbf   : > { %v4632_v52 = vld [vmem:[#allocation2 + $0x8] sm:$0xff]  ;;  %1258 = vmatmul.bf16.gmra.mxu1 %v4630_v51 }
  0xc0   : > { %v492_v55 = vpop.f32.mrf.mxu0  ;;  %1342 = vmatmul.bf16.vlgmr.msra.gmra.mxu2 %v4632_v52 }
  0xc1   : > { %v493_v56 = vadd.f32 %v4612_v37, %v492_v55 }
  0xc3   : > { %v568_v59 = vmax.f32 %v493_v56, 0.0 }
  0xc5   : > { %v4118_v60 = vpack.c.bf16 %v568_v59, %v567_v58 }
  0xc7   : > { %4334 = vst [vmem:[#allocation2 + $0x10] sm:$0xff] %v4118_v60  }
  0xc8   : > { %v495_v63 = vpop.f32.mrf.mxu0 }
  0xc9   : > { %v496_v3 = vadd.f32 %v4612_v37, %v495_v63 }
  0xcb   : > { %534 = vmatmul.bf16.gmra.mxu0 %v3968_v62  ;;  %v569_v6 = vmax.f32 %v496_v3, 0.0 }
  0xce   : > { %v3984_v1 = vld [vmem:[#allocation2 + $0x10] sm:$0xff] }
  0xcf   : > { %v4653_v2 = vld [vmem:[#allocation2 + $0x10] sm:$0xff]  ;;  %1263 = vmatmul.bf16.gmra.mxu1 %v3984_v1 }
  0xd0   : > { %v497_v4 = vpop.f32.mrf.mxu0  ;;  %1347 = vmatmul.bf16.gmra.mxu2 %v4653_v2 }
  0xd1   : > { %v498_v5 = vadd.f32 %v4612_v37, %v497_v4 }
  0xd3   : > { %v570_v7 = vmax.f32 %v498_v5, 0.0 }
  0xd5   : > { %v4123_v8 = vpack.c.bf16 %v570_v7, %v569_v6  ;;  %v1256_v6 = vpop.f32.mrf.mxu1  ;;  %v4068_v7 = vld [vmem:[%s5773_s3 + $0x70] sm:$0xff] }
  0xd6   : > { %1794 = vmatpush.bf16.msrb.mxu1 %v4068_v7  ;;  %v4071_v7 = vld [vmem:[%s5773_s3 + $0x88] sm:$0xff] }
  0xd7   : > { %4335 = vst [vmem:[#allocation2 + $0x18] sm:$0xff] %v4123_v8  }
  0xd8   : > { %v500_v10 = vpop.f32.mrf.mxu0 }
  0xd9   : > { %v501_v14 = vadd.f32 %v4612_v37, %v500_v10 }
  0xdb   : > { %539 = vmatmul.bf16.gmra.mxu0 %v3969_v9  ;;  %v571_v17 = vmax.f32 %v501_v14, 0.0  ;;  %v4067_v9 = vld [vmem:[%s5773_s3 + $0x68] sm:$0xff] }
  0xdc   : > { %1795 = vmatpush.bf16.msrb.mxu1 %v4067_v9 }
  0xde   : > { %v3985_v12 = vld [vmem:[#allocation2 + $0x18] sm:$0xff] }
  0xdf   : > { %v4664_v13 = vld [vmem:[#allocation2 + $0x18] sm:$0xff]  ;;  %1268 = vmatmul.bf16.gmra.mxu1 %v3985_v12 }
  0xe0   : > { %v502_v15 = vpop.f32.mrf.mxu0  ;;  %1352 = vmatmul.bf16.gmra.mxu2 %v4664_v13  ;;  %1796 = vmatpush.bf16.msrb.mxu1 %v4066_v11 }
  0xe1   : > { %v503_v16 = vadd.f32 %v4612_v37, %v502_v15 }
  0xe3   : > { %v572_v18 = vmax.f32 %v503_v16, 0.0 }
  0xe5   : > { %v4128_v19 = vpack.c.bf16 %v572_v18, %v571_v17  ;;  %v4065_v17 = vld [vmem:[%s5773_s3 + $0x58] sm:$0xff] }
  0xe6   : > { %v4077_v18 = vld [vmem:[%s5773_s3 + $0xb8] sm:$0xff]  ;;  %1797 = vmatpush.bf16.msrb.mxu1 %v4065_v17 }
  0xe7   : > { %4336 = vst [vmem:[#allocation2 + $0x20] sm:$0xff] %v4128_v19   ;;  %1882 = vmatpush.bf16.msrb.mxu2 %v4077_v18 }
  0xe8   : > { %v505_v20 = vpop.f32.mrf.mxu0 }
  0xe9   : > { %v506_v23 = vadd.f32 %v4612_v37, %v505_v20  ;;  %v545_v20 = vpop.f32.mrf.mxu3 }
  0xeb   : > { %1712 = vmatmul.bf16.vlgmr.msrb.gmra.mxu0 %v4577_v28  ;;  %v573_v26 = vmax.f32 %v506_v23, 0.0 }
  0xee   : > { %v3986_v21 = vld [vmem:[#allocation2 + $0x20] sm:$0xff] }
  0xef   : > { %v4670_v22 = vld [vmem:[#allocation2 + $0x20] sm:$0xff]  ;;  %1273 = vmatmul.bf16.gmra.mxu1 %v3986_v21 }
  0xf0   : > { %v507_v24 = vpop.f32.mrf.mxu0  ;;  %1357 = vmatmul.bf16.gmra.mxu2 %v4670_v22 }
  0xf1   : > { %v508_v25 = vadd.f32 %v4612_v37, %v507_v24 }
  0xf3   : > { %v574_v27 = vmax.f32 %v508_v25, 0.0 }
  0xf5   : > { %v4133_v29 = vpack.c.bf16 %v574_v27, %v573_v26  ;;  %v4064_v26 = vld [vmem:[%s5773_s3 + $0x50] sm:$0xff] }
  0xf6   : > { %v4076_v27 = vld [vmem:[%s5773_s3 + $0xb0] sm:$0xff]  ;;  %1798 = vmatpush.bf16.msrb.mxu1 %v4064_v26 }
  0xf7   : > { %4337 = vst [vmem:[#allocation2 + $0x28] sm:$0xff] %v4133_v29   ;;  %1883 = vmatpush.bf16.msrb.mxu2 %v4076_v27 }
  0xf8   : > { %v510_v30 = vpop.f32.mrf.mxu0 }
  0xf9   : > { %v511_v32 = vadd.f32 %v4612_v37, %v510_v30 }
  0xfb   : > { %1717 = vmatmul.bf16.gmra.mxu0 %v4630_v51  ;;  %v575_v35 = vmax.f32 %v511_v32, 0.0  ;;  %v546_v32 = vadd.f32 %v4612_v37, %v545_v20 }
  0xfe   : > { %v3987_v31 = vld [vmem:[#allocation2 + $0x28] sm:$0xff] }
  0xff   : > { %v4676_v28 = vld [vmem:[#allocation2 + $0x28] sm:$0xff]  ;;  %1278 = vmatmul.bf16.gmra.mxu1 %v3987_v31 }
 0x100   : > { %v512_v33 = vpop.f32.mrf.mxu0  ;;  %1362 = vmatmul.bf16.gmra.mxu2 %v4676_v28 }
 0x101   : > { %v513_v34 = vadd.f32 %v4612_v37, %v512_v33  ;;  %v4063_v33 = vld [vmem:[%s5773_s3 + $0x48] sm:$0xff] }
 0x102   : > { %1799 = vmatpush.bf16.msrb.mxu1 %v4063_v33 }
 0x103   : > { %v576_v36 = vmax.f32 %v513_v34, 0.0  ;;  %v4075_v34 = vld [vmem:[%s5773_s3 + $0xa8] sm:$0xff] }
 0x104   : > { %1884 = vmatpush.bf16.msrb.mxu2 %v4075_v34 }
 0x105   : > { %v4138_v38 = vpack.c.bf16 %v576_v36, %v575_v35  ;;  %v547_v36 = vpop.f32.mrf.mxu3 }
 0x107   : > { %4338 = vst [vmem:[#allocation2 + $0x30] sm:$0xff] %v4138_v38   ;;  %v589_v38 = vmax.f32 %v546_v32, 0.0 }
 0x108   : > { %v515_v39 = vpop.f32.mrf.mxu0 }
 0x109   : > { %v516_v42 = vadd.f32 %v4612_v37, %v515_v39  ;;  %v548_v39 = vadd.f32 %v4612_v37, %v547_v36 }
 0x10b   : > { %1722 = vmatmul.bf16.gmra.mxu0 %v3984_v1  ;;  %v577_v45 = vmax.f32 %v516_v42, 0.0 }
 0x10e   : > { %v4681_v40 = vld [vmem:[#allocation2 + $0x30] sm:$0xff] }
 0x10f   : > { %v4683_v41 = vld [vmem:[#allocation2 + $0x30] sm:$0xff]  ;;  %1283 = vmatmul.bf16.gmra.mxu1 %v4681_v40 }
 0x110   : > { %v517_v43 = vpop.f32.mrf.mxu0  ;;  %1367 = vmatmul.bf16.gmra.mxu2 %v4683_v41 }
 0x111   : > { %v518_v44 = vadd.f32 %v4612_v37, %v517_v43  ;;  %v590_v43 = vmax.f32 %v548_v39, 0.0 }
 0x113   : > { %v578_v46 = vmax.f32 %v518_v44, 0.0  ;;  %v4062_v44 = vld [vmem:[%s5773_s3 + $0x40] sm:$0xff] }
 0x114   : > { %1800 = vmatpush.bf16.msrb.mxu1 %v4062_v44 }
 0x115   : > { %v4143_v47 = vpack.c.bf16 %v578_v46, %v577_v45  ;;  %v4074_v45 = vld [vmem:[%s5773_s3 + $0xa0] sm:$0xff] }
 0x116   : > { %1885 = vmatpush.bf16.msrb.mxu2 %v4074_v45 }
 0x117   : > { %4339 = vst [vmem:[#allocation2 + $0x38] sm:$0xff] %v4143_v47  }
 0x118   : > { %v520_v48 = vpop.f32.mrf.mxu0 }
 0x119   : > { %v521_v54 = vadd.f32 %v4612_v37, %v520_v48  ;;  %v4173_v48 = vpack.c.bf16 %v590_v43, %v589_v38 }
 0x11b   : > { %1727 = vmatmul.bf16.gmra.mxu0 %v3985_v12  ;;  %v579_v57 = vmax.f32 %v521_v54, 0.0  ;;  %4345 = vst [vmem:[#allocation2 + $0x68] sm:$0xff] %v4173_v48  }
 0x11e   : > { %v4693_v51 = vld [vmem:[#allocation2 + $0x38] sm:$0xff] }
 0x11f   : > { %v4695_v53 = vld [vmem:[#allocation2 + $0x38] sm:$0xff]  ;;  %1288 = vmatmul.bf16.gmra.mxu1 %v4693_v51 }
 0x120   : > { %v522_v55 = vpop.f32.mrf.mxu0  ;;  %1372 = vmatmul.bf16.gmra.mxu2 %v4695_v53 }
 0x121   : > { %v523_v56 = vadd.f32 %v4612_v37, %v522_v55  ;;  %v550_v55 = vpop.f32.mrf.mxu3 }
 0x123   : > { %v580_v58 = vmax.f32 %v523_v56, 0.0  ;;  %v4073_v56 = vld [vmem:[%s5773_s3 + $0x98] sm:$0xff] }
 0x124   : > { %1886 = vmatpush.bf16.msrb.mxu2 %v4073_v56 }
 0x125   : > { %v4148_v59 = vpack.c.bf16 %v580_v58, %v579_v57 }
 0x127   : > { %4340 = vst [vmem:[#allocation2 + $0x40] sm:$0xff] %v4148_v59  }
 0x128   : > { %v525_v60 = vpop.f32.mrf.mxu0 }
 0x129   : > { %v526_v0 = vadd.f32 %v4612_v37, %v525_v60 }
 0x12b   : > { %1732 = vmatmul.bf16.gmra.mxu0 %v3986_v21  ;;  %v581_v4 = vmax.f32 %v526_v0, 0.0  ;;  %v4072_v0 = vld [vmem:[%s5773_s3 + $0x90] sm:$0xff] }
 0x12c   : > { %1887 = vmatpush.bf16.msrb.mxu2 %v4072_v0  ;;  %v4819_v0 = vld [vmem:[#allocation2 + $0x10] sm:$0xff] }
 0x12e   : > { %v4701_v62 = vld [vmem:[#allocation2 + $0x40] sm:$0xff] }
 0x12f   : > { %v4703_v63 = vld [vmem:[#allocation2 + $0x40] sm:$0xff]  ;;  %1293 = vmatmul.bf16.gmra.mxu1 %v4701_v62 }
 0x130   : > { %v527_v1 = vpop.f32.mrf.mxu0  ;;  %1377 = vmatmul.bf16.gmra.mxu2 %v4703_v63 }
 0x131   : > { %v528_v3 = vadd.f32 %v4612_v37, %v527_v1  ;;  %1888 = vmatpush.bf16.msrb.mxu2 %v4071_v7 }
 0x133   : > { %v582_v5 = vmax.f32 %v528_v3, 0.0 }
 0x135   : > { %v4153_v8 = vpack.c.bf16 %v582_v5, %v581_v4  ;;  %v551_v4 = vadd.f32 %v4612_v37, %v550_v55 }
 0x137   : > { %4341 = vst [vmem:[#allocation2 + $0x48] sm:$0xff] %v4153_v8   ;;  %v591_v8 = vmax.f32 %v551_v4, 0.0 }
 0x138   : > { %v530_v10 = vpop.f32.mrf.mxu0 }
 0x139   : > { %v531_v16 = vadd.f32 %v4612_v37, %v530_v10 }
 0x13b   : > { %1737 = vmatmul.bf16.gmra.mxu0 %v3987_v31  ;;  %v583_v23 = vmax.f32 %v531_v16, 0.0  ;;  %v4070_v16 = vld [vmem:[%s5773_s3 + $0x80] sm:$0xff] }
 0x13c   : > { %v1259_v12 = vpop.f32.mrf.mxu1  ;;  %1889 = vmatpush.bf16.msrb.mxu2 %v4070_v16  ;;  %v4053_v16 = vld [vmem:[%s5773_s3 + $0x178] sm:$0xff] }
 0x13e   : > { %v4718_v14 = vld [vmem:[#allocation2 + $0x48] sm:$0xff] }
 0x13f   : > { %v4720_v15 = vld [vmem:[#allocation2 + $0x48] sm:$0xff]  ;;  %1298 = vmatmul.bf16.gmra.mxu1 %v4718_v14 }
 0x140   : > { %v532_v19 = vpop.f32.mrf.mxu0  ;;  %1382 = vmatmul.bf16.gmra.mxu2 %v4720_v15 }
 0x141   : > { %v533_v21 = vadd.f32 %v4612_v37, %v532_v19 }
 0x143   : > { %v584_v24 = vmax.f32 %v533_v21, 0.0  ;;  %v1343_v25 = vpop.f32.mrf.mxu2 }
 0x144   : > { %v4738_v29 = vadd.f32 %v1343_v25, %v1254_v61  ;;  %v1261_v31 = vpop.f32.mrf.mxu1 }
 0x145   : > { %v4158_v30 = vpack.c.bf16 %v584_v24, %v583_v23 }
 0x147   : > { %4342 = vst [vmem:[#allocation2 + $0x50] sm:$0xff] %v4158_v30  }
 0x148   : > { %v535_v35 = vpop.f32.mrf.mxu0 }
 0x14b   : > { %1742 = vmatmul.bf16.gmra.mxu0 %v4681_v40  ;;  %v1345_v42 = vpop.f32.mrf.mxu2  ;;  %v536_v40 = vadd.f32 %v4612_v37, %v535_v35 }
 0x14c   : > { %v4755_v46 = vadd.f32 %v1345_v42, %v1256_v6  ;;  %v1264_v47 = vpop.f32.mrf.mxu1  ;;  %v552_v6 = vpop.f32.mrf.mxu3 }
 0x14d   : > { %v585_v58 = vmax.f32 %v536_v40, 0.0  ;;  %v553_v9 = vadd.f32 %v4612_v37, %v552_v6 }
 0x14e   : > { %v4757_v49 = vld [vmem:[#allocation2 + $0x50] sm:$0xff] }
 0x14f   : > { %v4759_v50 = vld [vmem:[#allocation2 + $0x50] sm:$0xff]  ;;  %1303 = vmatmul.bf16.gmra.mxu1 %v4757_v49  ;;  %v592_v11 = vmax.f32 %v553_v9, 0.0 }
 0x150   : > { %v537_v54 = vpop.f32.mrf.mxu0  ;;  %1387 = vmatmul.bf16.gmra.mxu2 %v4759_v50 }
 0x151   : > { %v538_v57 = vadd.f32 %v4612_v37, %v537_v54  ;;  %v4178_v18 = vpack.c.bf16 %v592_v11, %v591_v8 }
 0x153   : > { %v586_v59 = vmax.f32 %v538_v57, 0.0  ;;  %v1348_v60 = vpop.f32.mrf.mxu2  ;;  %4346 = vst [vmem:[#allocation2 + $0x70] sm:$0xff] %v4178_v18  }
 0x154   : > { %v4768_v61 = vadd.f32 %v1348_v60, %v1259_v12  ;;  %v1266_v3 = vpop.f32.mrf.mxu1  ;;  %v4817_v60 = vld [vmem:[#allocation2 + $0x68] sm:$0xff] }
 0x155   : > { %v4163_v1 = vpack.c.bf16 %v586_v59, %v585_v58 }
 0x157   : > { %4343 = vst [vmem:[#allocation2 + $0x58] sm:$0xff] %v4163_v1  }
 0x158   : > { %v540_v5 = vpop.f32.mrf.mxu0 }
 0x159   : > { %v541_v21 = vadd.f32 %v4612_v37, %v540_v5 }
 0x15a   : > { %v4833_v9 = vld [vmem:[#allocation2 + $0x70] sm:$0xff] }
 0x15b   : > { %1747 = vmatmul.bf16.gmra.mxu0 %v4693_v51  ;;  %v1350_v10 = vpop.f32.mrf.mxu2  ;;  %v555_v51 = vpop.f32.mrf.mxu3  ;;  %v587_v25 = vmax.f32 %v541_v21, 0.0 }
 0x15c   : > { %v4779_v12 = vadd.f32 %v1350_v10, %v1261_v31  ;;  %v1269_v17 = vpop.f32.mrf.mxu1  ;;  %v556_v33 = vadd.f32 %v4612_v37, %v555_v51  ;;  %v4835_v10 = vld [vmem:[#allocation2 + $0x18] sm:$0xff] }
 0x15e   : > { %v4784_v19 = vld [vmem:[#allocation2 + $0x58] sm:$0xff]  ;;  %v593_v36 = vmax.f32 %v556_v33, 0.0  ;;  %v4051_v33 = vld [vmem:[%s5773_s3 + $0x168] sm:$0xff] }
 0x15f   : > { %v4786_v20 = vld [vmem:[#allocation2 + $0x58] sm:$0xff]  ;;  %1308 = vmatmul.bf16.gmra.mxu1 %v4784_v19 }
 0x160   : > { %v542_v23 = vpop.f32.mrf.mxu0  ;;  %1392 = vmatmul.bf16.gmra.mxu2 %v4786_v20 }
 0x161   : > { %v543_v24 = vadd.f32 %v4612_v37, %v542_v23  ;;  %v4052_v23 = vld [vmem:[%s5773_s3 + $0x170] sm:$0xff] }
 0x163   : > { %v588_v26 = vmax.f32 %v543_v24, 0.0  ;;  %v1353_v27 = vpop.f32.mrf.mxu2  ;;  %v557_v35 = vpop.f32.mrf.mxu3 }
 0x164   : > { %v4792_v30 = vadd.f32 %v1353_v27, %v1264_v47  ;;  %v1271_v32 = vpop.f32.mrf.mxu1  ;;  %v558_v38 = vadd.f32 %v4612_v37, %v557_v35  ;;  %v4857_v27 = vld [vmem:[#allocation2 + $0x20] sm:$0xff] }
 0x165   : > { %v4168_v31 = vpack.c.bf16 %v588_v26, %v587_v25  ;;  %5804 = vst [vmem:[#allocation12_spill] sm:$0xff] %v4857_v27 }
 0x166   : > { %5795 = vst [vmem:[#allocation3_spill] sm:$0xff] %v4792_v30  ;;  %v594_v42 = vmax.f32 %v558_v38, 0.0 }
 0x167   : > { %4344 = vst [vmem:[#allocation2 + $0x60] sm:$0xff] %v4168_v31  }
 0x168   : > { %v4795_v34 = vpop.f32.mrf.mxu0  ;;  %v4183_v45 = vpack.c.bf16 %v594_v42, %v593_v36 }
 0x16a   : > { %4347 = vst [vmem:[#allocation2 + $0x78] sm:$0xff] %v4183_v45  }
 0x16b   : > { %1752 = vmatmul.bf16.gmra.mxu0 %v4701_v62  ;;  %v1355_v39 = vpop.f32.mrf.mxu2 }
 0x16c   : > { %v4799_v43 = vadd.f32 %v1355_v39, %v1266_v3  ;;  %v1274_v44 = vpop.f32.mrf.mxu1 }
 0x16e   : > { %5796 = vst [vmem:[#allocation4_spill] sm:$0xff] %v4799_v43  ;;  %v4801_v47 = vld [vmem:[#allocation2 + $0x60] sm:$0xff] }
 0x16f   : > { %v4803_v48 = vld [vmem:[#allocation2 + $0x60] sm:$0xff]  ;;  %1313 = vmatmul.bf16.vlgmr.msrb.gmra.mxu3 %v4801_v47  ;;  %1801 = vmatmul.bf16.vlgmr.msrb.gmra.mxu1 %v4632_v52 }
 0x170   : > { %5797 = vst [vmem:[#allocation5_spill] sm:$0xff] %v4803_v48  ;;  %v4805_v40 = vpop.f32.mrf.mxu0  ;;  %1397 = vmatmul.bf16.gmra.mxu2 %v4803_v48  ;;  %1423 = vmatpush.bf16.msrb.mxu3 %v4053_v16  ;;  %v4884_v16 = vld [vmem:[#allocation2 + $0x28] sm:$0xff]  ;;  %v5054_v30 = vld [vmem:[#allocation2 + $0x60] sm:$0xff] }
 0x171   : > { %v4855_v26 = vld [vmem:[#allocation2 + $0x78] sm:$0xff]  ;;  %5807 = vst [vmem:[#allocation15_spill] sm:$0xff] %v4884_v16 }
 0x173   : > { %v1358_v62 = vpop.f32.mrf.mxu2 }
 0x174   : > { %v4810_v54 = vadd.f32 %v1358_v62, %v1269_v17  ;;  %v1276_v55 = vpop.f32.mrf.mxu1  ;;  %1424 = vmatpush.bf16.msrb.mxu3 %v4052_v23  ;;  %v4091_v23 = vld [vmem:[%s5773_s3 + $0x1e8] sm:$0xff] }
 0x176   : > { %5798 = vst [vmem:[#allocation6_spill] sm:$0xff] %v4810_v54 }
 0x178   : > { %v4812_v56 = vpop.f32.mrf.mxu0  ;;  %1425 = vmatpush.bf16.msrb.mxu3 %v4051_v33  ;;  %v4090_v33 = vld [vmem:[%s5773_s3 + $0x1e0] sm:$0xff] }
 0x17b   : > { %1757 = vmatmul.bf16.gmra.mxu0 %v4718_v14  ;;  %v1360_v57 = vpop.f32.mrf.mxu2 }
 0x17c   : > { %v4815_v58 = vadd.f32 %v1360_v57, %v1271_v32  ;;  %v1279_v59 = vpop.f32.mrf.mxu1  ;;  %v560_v32 = vpop.f32.mrf.mxu3 }
 0x17d   : > { %v561_v38 = vadd.f32 %v4612_v37, %v560_v32 }
 0x17e   : > { %5799 = vst [vmem:[#allocation7_spill] sm:$0xff] %v4815_v58 }
 0x17f   : > { %1318 = vmatmul.bf16.gmra.mxu3 %v4817_v60  ;;  %1806 = vmatmul.bf16.gmra.mxu1 %v4653_v2  ;;  %v595_v45 = vmax.f32 %v561_v38, 0.0  ;;  %v4048_v38 = vld [vmem:[%s5773_s3 + $0x150] sm:$0xff] }
 0x180   : > { %v4821_v1 = vpop.f32.mrf.mxu0  ;;  %1890 = vmatmul.bf16.vlgmr.msrb.gmra.mxu2 %v4819_v0 }
 0x183   : > { %v1363_v3 = vpop.f32.mrf.mxu2 }
 0x184   : > { %v4826_v4 = vadd.f32 %v1363_v3, %v1274_v44  ;;  %v1281_v14 = vpop.f32.mrf.mxu1  ;;  %v562_v42 = vpop.f32.mrf.mxu3  ;;  %v4050_v44 = vld [vmem:[%s5773_s3 + $0x160] sm:$0xff] }
 0x185   : > { %v563_v62 = vadd.f32 %v4612_v37, %v562_v42  ;;  %1426 = vmatpush.bf16.msrb.mxu3 %v4050_v44  ;;  %v4092_v37 = vld [vmem:[%s5773_s3 + $0x1f0] sm:$0xff] }
 0x186   : > { %5800 = vst [vmem:[#allocation8_spill] sm:$0xff] %v4826_v4 }
 0x187   : > { %v596_v57 = vmax.f32 %v563_v62, 0.0  ;;  %v4916_v62 = vld [vmem:[#allocation2 + $0x70] sm:$0xff] }
 0x188   : > { %v4828_v5 = vpop.f32.mrf.mxu0 }
 0x18b   : > { %1762 = vmatmul.bf16.gmra.mxu0 %v4757_v49  ;;  %v1365_v6 = vpop.f32.mrf.mxu2 }
 0x18c   : > { %v4831_v7 = vadd.f32 %v1365_v6, %v1276_v55  ;;  %v1284_v8 = vpop.f32.mrf.mxu1  ;;  %v4188_v6 = vpack.c.bf16 %v596_v57, %v595_v45  ;;  %v4088_v57 = vld [vmem:[%s5773_s3 + $0x1d0] sm:$0xff] }
 0x18e   : > { %5801 = vst [vmem:[#allocation9_spill] sm:$0xff] %v4831_v7 }
 0x18f   : > { %1323 = vmatmul.bf16.gmra.mxu3 %v4833_v9  ;;  %1811 = vmatmul.bf16.gmra.mxu1 %v4664_v13  ;;  %4348 = vst [vmem:[#allocation2 + $0x80] sm:$0xff] %v4188_v6   ;;  %v4087_v6 = vld [vmem:[%s5773_s3 + $0x1c8] sm:$0xff] }
 0x190   : > { %v4837_v11 = vpop.f32.mrf.mxu0  ;;  %1895 = vmatmul.bf16.gmra.mxu2 %v4835_v10 }
 0x193   : > { %v1368_v49 = vpop.f32.mrf.mxu2 }
 0x194   : > { %v4845_v17 = vadd.f32 %v1368_v49, %v1279_v59  ;;  %v1286_v18 = vpop.f32.mrf.mxu1  ;;  %v4093_v59 = vld [vmem:[%s5773_s3 + $0x1f8] sm:$0xff] }
 0x195   : > { %2414 = vmatpush.bf16.msra.mxu0 %v4093_v59  ;;  %v4049_v49 = vld [vmem:[%s5773_s3 + $0x158] sm:$0xff] }
 0x196   : > { %5802 = vst [vmem:[#allocation10_spill] sm:$0xff] %v4845_v17  ;;  %1427 = vmatpush.bf16.msrb.mxu3 %v4049_v49  ;;  %v5007_v17 = vld [vmem:[#allocation2 + $0x50] sm:$0xff] }
 0x198   : > { %v4847_v21 = vpop.f32.mrf.mxu0 }
 0x199   : > { %2415 = vmatpush.bf16.msra.mxu0 %v4092_v37 }
 0x19a   : > { %1428 = vmatpush.bf16.msrb.mxu3 %v4048_v38 }
 0x19b   : > { %1767 = vmatmul.bf16.gmra.mxu0 %v4784_v19  ;;  %v1370_v51 = vpop.f32.mrf.mxu2 }
 0x19c   : > { %v4853_v24 = vadd.f32 %v1370_v51, %v1281_v14  ;;  %v1289_v25 = vpop.f32.mrf.mxu1 }
 0x19d   : > { %2416 = vmatpush.bf16.msra.mxu0 %v4091_v23  ;;  %v4046_v23 = vld [vmem:[%s5773_s3 + $0x140] sm:$0xff] }
 0x19e   : > { %5803 = vst [vmem:[#allocation11_spill] sm:$0xff] %v4853_v24 }
 0x19f   : > { %1328 = vmatmul.bf16.gmra.mxu3 %v4855_v26  ;;  %1816 = vmatmul.bf16.gmra.mxu1 %v4670_v22 }
 0x1a0   : > { %v4859_v31 = vpop.f32.mrf.mxu0  ;;  %1900 = vmatmul.bf16.gmra.mxu2 %v4857_v27 }
 0x1a1   : > { %2417 = vmatpush.bf16.msra.mxu0 %v4090_v33 }
 0x1a3   : > { %v1373_v19 = vpop.f32.mrf.mxu2 }
 0x1a4   : > { %v4867_v35 = vadd.f32 %v1373_v19, %v1284_v8  ;;  %v1291_v36 = vpop.f32.mrf.mxu1  ;;  %v4882_v8 = vld [vmem:[#allocation2 + $0x68] sm:$0xff] }
 0x1a6   : > { %5805 = vst [vmem:[#allocation13_spill] sm:$0xff] %v4867_v35 }
 0x1a8   : > { %v4870_v39 = vpop.f32.mrf.mxu0 }
 0x1ab   : > { %1772 = vmatmul.bf16.gmra.mxu0 %v4801_v47  ;;  %v1375_v55 = vpop.f32.mrf.mxu2 }
 0x1ac   : > { %v4880_v3 = vadd.f32 %v1375_v55, %v1286_v18  ;;  %v1294_v14 = vpop.f32.mrf.mxu1  ;;  %v4918_v55 = vld [vmem:[#allocation2 + $0x30] sm:$0xff] }
 0x1ae   : > { %5806 = vst [vmem:[#allocation14_spill] sm:$0xff] %v4880_v3 }
 0x1af   : > { %1402 = vmatmul.bf16.vlgmr.msra.gmra.mxu3 %v4882_v8  ;;  %1821 = vmatmul.bf16.gmra.mxu1 %v4676_v28 }
 0x1b0   : > { %v4889_v47 = vpop.f32.mrf.mxu0  ;;  %1905 = vmatmul.bf16.gmra.mxu2 %v4884_v16 }
 0x1b3   : > { %v1378_v18 = vpop.f32.mrf.mxu2 }
 0x1b4   : > { %v4900_v51 = vadd.f32 %v1378_v18, %v1289_v25  ;;  %v1296_v32 = vpop.f32.mrf.mxu1  ;;  %v4089_v25 = vld [vmem:[%s5773_s3 + $0x1d8] sm:$0xff]  ;;  %v4086_v18 = vld [vmem:[%s5773_s3 + $0x1c0] sm:$0xff] }
 0x1b5   : > { %2418 = vmatpush.bf16.msra.mxu0 %v4089_v25  ;;  %v4947_v25 = vld [vmem:[#allocation2 + $0x78] sm:$0xff] }
 0x1b6   : > { %5808 = vst [vmem:[#allocation16_spill] sm:$0xff] %v4900_v51 }
 0x1b8   : > { %v4905_v19 = vpop.f32.mrf.mxu0 }
 0x1b9   : > { %2419 = vmatpush.bf16.msra.mxu0 %v4088_v57  ;;  %v4949_v57 = vld [vmem:[#allocation2 + $0x38] sm:$0xff] }
 0x1bb   : > { %1777 = vmatmul.bf16.gmra.mxu0 %v4817_v60  ;;  %v1380_v42 = vpop.f32.mrf.mxu2  ;;  %v4047_v60 = vld [vmem:[%s5773_s3 + $0x148] sm:$0xff] }
 0x1bc   : > { %v4914_v44 = vadd.f32 %v1380_v42, %v1291_v36  ;;  %v1299_v45 = vpop.f32.mrf.mxu1  ;;  %1429 = vmatpush.bf16.msrb.mxu3 %v4047_v60 }
 0x1bd   : > { %2420 = vmatpush.bf16.msra.mxu0 %v4087_v6 }
 0x1be   : > { %5809 = vst [vmem:[#allocation17_spill] sm:$0xff] %v4914_v44  ;;  %v4969_v44 = vld [vmem:[#allocation2 + $0x40] sm:$0xff] }
 0x1bf   : > { %1407 = vmatmul.bf16.gmra.mxu3 %v4916_v62  ;;  %1826 = vmatmul.bf16.gmra.mxu1 %v4683_v41  ;;  %5814 = vst [vmem:[#allocation22_spill] sm:$0xff] %v4969_v44 }
 0x1c0   : > { %1910 = vmatmul.bf16.gmra.mxu2 %v4918_v55  ;;  %v4929_v36 = vpop.f32.mrf.mxu0  ;;  %1430 = vmatpush.bf16.msrb.mxu3 %v4046_v23 }
 0x1c1   : > { %2421 = vmatpush.bf16.msra.mxu0 %v4086_v18  ;;  %v4101_v18 = vld [vmem:[%s5773_s3 + $0x238] sm:$0xff] }
 0x1c2   : > { %2503 = vmatpush.bf16.msra.mxu1 %v4101_v18 }
 0x1c3   : > { %v1383_v59 = vpop.f32.mrf.mxu2 }
 0x1c4   : > { %v4934_v37 = vadd.f32 %v1383_v59, %v1294_v14  ;;  %v1301_v49 = vpop.f32.mrf.mxu1 }
 0x1c6   : > { %5810 = vst [vmem:[#allocation18_spill] sm:$0xff] %v4934_v37  ;;  %v4967_v37 = vld [vmem:[#allocation2 + $0x80] sm:$0xff] }
 0x1c8   : > { %v4943_v38 = vpop.f32.mrf.mxu0 }
 0x1cb   : > { %1782 = vmatmul.bf16.gmra.mxu0 %v4833_v9  ;;  %v1385_v33 = vpop.f32.mrf.mxu2  ;;  %v4085_v9 = vld [vmem:[%s5773_s3 + $0x1b8] sm:$0xff] }
 0x1cc   : > { %v4945_v42 = vadd.f32 %v1385_v33, %v1296_v32  ;;  %v1304_v14 = vpop.f32.mrf.mxu1  ;;  %2325 = vmatpush.bf16.msra.mxu3 %v4085_v9 }
 0x1ce   : > { %5811 = vst [vmem:[#allocation19_spill] sm:$0xff] %v4945_v42 }
 0x1cf   : > { %1412 = vmatmul.bf16.gmra.mxu3 %v4947_v25  ;;  %1831 = vmatmul.bf16.gmra.mxu1 %v4695_v53 }
 0x1d0   : > { %1915 = vmatmul.bf16.gmra.mxu2 %v4949_v57  ;;  %v4959_v6 = vpop.f32.mrf.mxu0 }
 0x1d3   : > { %v1388_v60 = vpop.f32.mrf.mxu2 }
 0x1d4   : > { %v4957_v59 = vadd.f32 %v1388_v60, %v1299_v45  ;;  %v1306_v32 = vpop.f32.mrf.mxu1 }
 0x1d6   : > { %5812 = vst [vmem:[#allocation20_spill] sm:$0xff] %v4957_v59  ;;  %v4983_v59 = vld [vmem:[#allocation2 + $0x48] sm:$0xff] }
 0x1d8   : > { %v4971_v45 = vpop.f32.mrf.mxu0 }
 0x1db   : > { %1787 = vmatmul.bf16.gmra.mxu0 %v4855_v26  ;;  %v1390_v23 = vpop.f32.mrf.mxu2 }
 0x1dc   : > { %v4965_v33 = vadd.f32 %v1390_v23, %v1301_v49  ;;  %v1309_v42 = vpop.f32.mrf.mxu1 }
 0x1de   : > { %5813 = vst [vmem:[#allocation21_spill] sm:$0xff] %v4965_v33 }
 0x1df   : > { %1417 = vmatmul.bf16.gmra.mxu3 %v4967_v37  ;;  %1836 = vmatmul.bf16.gmra.mxu1 %v4703_v63 }
 0x1e0   : > { %1920 = vmatmul.bf16.gmra.mxu2 %v4969_v44  ;;  %v4978_v18 = vpop.f32.mrf.mxu0 }
 0x1e3   : > { %v1393_v9 = vpop.f32.mrf.mxu2 }
 0x1e4   : > { %v4976_v60 = vadd.f32 %v1393_v9, %v1304_v14  ;;  %v1311_v26 = vpop.f32.mrf.mxu1  ;;  %v4084_v14 = vld [vmem:[%s5773_s3 + $0x1b0] sm:$0xff] }
 0x1e5   : > { %2326 = vmatpush.bf16.msra.mxu3 %v4084_v14 }
 0x1e6   : > { %5815 = vst [vmem:[#allocation23_spill] sm:$0xff] %v4976_v60 }
 0x1eb   : > { %2422 = vmatmul.bf16.vlgmr.msra.gmra.mxu0 %v4632_v52  ;;  %v1395_v49 = vpop.f32.mrf.mxu2  ;;  %v4993_v52 = vpop.f32.mrf.mxu0 }
 0x1ec   : > { %v4981_v23 = vadd.f32 %v1395_v49, %v1306_v32  ;;  %v1802_v33 = vpop.f32.mrf.mxu1 }
 0x1ee   : > { %5816 = vst [vmem:[#allocation24_spill] sm:$0xff] %v4981_v23  ;;  %v4100_v23 = vld [vmem:[%s5773_s3 + $0x230] sm:$0xff] }
 0x1ef   : > { %1431 = vmatmul.bf16.vlgmr.msrb.gmra.mxu3 %v4819_v0  ;;  %1841 = vmatmul.bf16.gmra.mxu1 %v4720_v15 }
 0x1f0   : > { %1925 = vmatmul.bf16.gmra.mxu2 %v4983_v59  ;;  %2504 = vmatpush.bf16.msra.mxu1 %v4100_v23 }
 0x1f2   : > { %v4991_v9 = vpop.f32.mrf.mxu3 }
 0x1f3   : > { %v1398_v60 = vpop.f32.mrf.mxu2  ;;  %v5005_v24 = vpop.f32.mrf.mxu0 }
 0x1f4   : > { %v4995_v32 = vadd.f32 %v1398_v60, %v1309_v42  ;;  %v1804_v49 = vpop.f32.mrf.mxu1  ;;  %v1803_v42 = vadd.f32 %v1802_v33, %v4795_v34  ;;  %v5024_v33 = vld [vmem:[#allocation2 + $0x58] sm:$0xff] }
 0x1f6   : > { %5817 = vst [vmem:[#allocation25_spill] sm:$0xff] %v4995_v32 }
 0x1fa   : > { %v5001_v51 = vpop.f32.mrf.mxu3 }
 0x1fb   : > { %2427 = vmatmul.bf16.gmra.mxu0 %v4653_v2  ;;  %v1400_v3 = vpop.f32.mrf.mxu2 }
 0x1fc   : > { %v5003_v35 = vadd.f32 %v1400_v3, %v1311_v26  ;;  %v1807_v14 = vpop.f32.mrf.mxu1  ;;  %v5017_v26 = vpop.f32.mrf.mxu0 }
 0x1fd   : > { %5819 = vst [vmem:[#allocation27_spill] sm:$0xff] %v5017_v26 }
 0x1fe   : > { %5818 = vst [vmem:[#allocation26_spill] sm:$0xff] %v5003_v35  ;;  %v1805_v35 = vadd.f32 %v1804_v49, %v4805_v40 }
 0x1ff   : > { %1436 = vmatmul.bf16.gmra.mxu3 %v4835_v10  ;;  %1846 = vmatmul.bf16.gmra.mxu1 %v4759_v50 }
 0x200   : > { %1930 = vmatmul.bf16.gmra.mxu2 %v5007_v17 }
 0x202   : > { %v5013_v60 = vpop.f32.mrf.mxu3 }
 0x203   : > { %v1891_v2 = vpop.f32.mrf.mxu2 }
 0x204   : > { %v5015_v23 = vadd.f32 %v1891_v2, %v1803_v42  ;;  %v1809_v3 = vpop.f32.mrf.mxu1 }
 0x206   : > { %v5778_v58 = vrot.slane %v5015_v23, 7 }
 0x20a   : > { %v5021_v32 = vpop.f32.mrf.mxu3 }
 0x20b   : > { %2432 = vmatmul.bf16.gmra.mxu0 %v4664_v13  ;;  %v1893_v7 = vpop.f32.mrf.mxu2  ;;  %v4083_v13 = vld [vmem:[%s5773_s3 + $0x1a8] sm:$0xff] }
 0x20c   : > { %v1894_v4 = vadd.f32 %v1893_v7, %v1805_v35  ;;  %v1812_v34 = vpop.f32.mrf.mxu1  ;;  %v5038_v7 = vpop.f32.mrf.mxu0  ;;  %2327 = vmatpush.bf16.msra.mxu3 %v4083_v13 }
 0x20d   : > { %5820 = vst [vmem:[#allocation28_spill] sm:$0xff] %v5038_v7 }
 0x20e   : > { %v2005_v54 = vrot.slane %v1894_v4, 7  ;;  %v1808_v4 = vadd.f32 %v1807_v14, %v4812_v56 }
 0x20f   : > { %1441 = vmatmul.bf16.gmra.mxu3 %v4857_v27  ;;  %1851 = vmatmul.bf16.gmra.mxu1 %v4786_v20 }
 0x210   : > { %1935 = vmatmul.bf16.gmra.mxu2 %v5024_v33  ;;  %v5031_v40 = vsel %vm2003_vm0, %v5778_v58, %v2005_v54  ;;  %v4099_v54 = vld [vmem:[%s5773_s3 + $0x228] sm:$0xff]  ;;  %v1810_v58 = vadd.f32 %v1809_v3, %v4821_v1  ;;  %v1813_v1 = vadd.f32 %v1812_v34, %v4828_v5 }
 0x211   : > { %2505 = vmatpush.bf16.msra.mxu1 %v4099_v54  ;;  %v5076_v34 = vld [vmem:[#allocation2 + $0x68] sm:$0xff] }
 0x212   : > { %v5040_v35 = vpop.f32.mrf.mxu3 }
 0x213   : > { %v1896_v49 = vpop.f32.mrf.mxu2 }
 0x214   : > { %v5042_v42 = vadd.f32 %v1896_v49, %v1808_v4  ;;  %v1814_v2 = vpop.f32.mrf.mxu1  ;;  %v5051_v14 = vpop.f32.mrf.mxu0 }
 0x215   : > { %5821 = vst [vmem:[#allocation29_spill] sm:$0xff] %v5051_v14  ;;  %v1815_v14 = vadd.f32 %v1814_v2, %v4837_v11  ;;  %v4082_v11 = vld [vmem:[%s5773_s3 + $0x1a0] sm:$0xff] }
 0x216   : > { %v5780_v13 = vrot.slane %v5042_v42, 7  ;;  %2328 = vmatpush.bf16.msra.mxu3 %v4082_v11 }
 0x21a   : > { %v5049_v43 = vpop.f32.mrf.mxu3 }
 0x21b   : > { %2437 = vmatmul.bf16.gmra.mxu0 %v4670_v22  ;;  %v1898_v56 = vpop.f32.mrf.mxu2 }
 0x21c   : > { %v1899_v7 = vadd.f32 %v1898_v56, %v1810_v58  ;;  %v1817_v49 = vpop.f32.mrf.mxu1  ;;  %v5069_v54 = vpop.f32.mrf.mxu0 }
 0x21d   : > { %v1818_v2 = vadd.f32 %v1817_v49, %v4847_v21 }
 0x21e   : > { %v2008_v4 = vrot.slane %v1899_v7, 7 }
 0x21f   : > { %1446 = vmatmul.bf16.gmra.mxu3 %v4884_v16  ;;  %1856 = vmatmul.bf16.gmra.mxu1 %v4803_v48 }
 0x220   : > { %1940 = vmatmul.bf16.gmra.mxu2 %v5054_v30  ;;  %v5061_v22 = vsel %vm2003_vm0, %v5780_v13, %v2008_v4 }
 0x222   : > { %v5065_v58 = vpop.f32.mrf.mxu3 }
 0x223   : > { %v1901_v3 = vpop.f32.mrf.mxu2 }
 0x224   : > { %v5067_v7 = vadd.f32 %v1901_v3, %v1813_v1  ;;  %v1819_v56 = vpop.f32.mrf.mxu1  ;;  %v5078_v27 = vpop.f32.mrf.mxu0 }
 0x225   : > { %5822 = vst [vmem:[#allocation30_spill] sm:$0xff] %v5078_v27  ;;  %v1820_v27 = vadd.f32 %v1819_v56, %v4859_v31 }
 0x226   : > { %v5783_v48 = vrot.slane %v5067_v7, 7 }
 0x22a   : > { %v5073_v16 = vpop.f32.mrf.mxu3 }
 0x22b   : > { %2442 = vmatmul.bf16.gmra.mxu0 %v4676_v28  ;;  %v1903_v4 = vpop.f32.mrf.mxu2 }
 0x22c   : > { %v1904_v13 = vadd.f32 %v1903_v4, %v1815_v14  ;;  %v1822_v5 = vpop.f32.mrf.mxu1 }
 0x22e   : > { %v2011_v26 = vrot.slane %v1904_v13, 7 }
 0x22f   : > { %1451 = vmatmul.bf16.gmra.mxu3 %v4918_v55  ;;  %1861 = vmatmul.bf16.gmra.mxu1 %v4882_v8 }
 0x230   : > { %1945 = vmatmul.bf16.gmra.mxu2 %v5076_v34  ;;  %v5085_v28 = vsel %vm2003_vm0, %v5783_v48, %v2011_v26  ;;  %v4098_v26 = vld [vmem:[%s5773_s3 + $0x220] sm:$0xff]  ;;  %v5100_v48 = vpop.f32.mrf.mxu0 }
 0x231   : > { %2506 = vmatpush.bf16.msra.mxu1 %v4098_v26 }
 0x232   : > { %v1403_v14 = vpop.f32.mrf.mxu3 }
 0x233   : > { %v1906_v13 = vpop.f32.mrf.mxu2  ;;  %v5093_v1 = vadd.f32 %v1403_v14, %v4991_v9 }
 0x234   : > { %v5095_v3 = vadd.f32 %v1906_v13, %v1818_v2  ;;  %v1824_v4 = vpop.f32.mrf.mxu1 }
 0x235   : > { %5823 = vst [vmem:[#allocation31_spill] sm:$0xff] %v5093_v1  ;;  %v5108_v1 = vld [vmem:[#allocation2 + $0x70] sm:$0xff] }
 0x236   : > { %v5784_v2 = vrot.slane %v5095_v3, 7 }
 0x238   : > { %v5122_v26 = vpop.f32.mrf.mxu0 }
 0x23a   : > { %v1405_v21 = vpop.f32.mrf.mxu3 }
 0x23b   : > { %2447 = vmatmul.bf16.gmra.mxu0 %v4683_v41  ;;  %v1908_v49 = vpop.f32.mrf.mxu2  ;;  %v5105_v11 = vadd.f32 %v1405_v21, %v5001_v51  ;;  %v4097_v41 = vld [vmem:[%s5773_s3 + $0x218] sm:$0xff] }
 0x23c   : > { %v1909_v9 = vadd.f32 %v1908_v49, %v1820_v27  ;;  %v1827_v13 = vpop.f32.mrf.mxu1  ;;  %v1823_v27 = vadd.f32 %v1822_v5, %v4870_v39  ;;  %2507 = vmatpush.bf16.msra.mxu1 %v4097_v41  ;;  %v4095_v39 = vld [vmem:[%s5773_s3 + $0x208] sm:$0xff]  ;;  %v1825_v5 = vadd.f32 %v1824_v4, %v4889_v47  ;;  %v5146_v47 = vld [vmem:[#allocation2 + $0x78] sm:$0xff] }
 0x23d   : > { %5824 = vst [vmem:[#allocation32_spill] sm:$0xff] %v5105_v11  ;;  %v1828_v4 = vadd.f32 %v1827_v13, %v4905_v19 }
 0x23e   : > { %v2014_v14 = vrot.slane %v1909_v9, 7  ;;  %v4096_v9 = vld [vmem:[%s5773_s3 + $0x210] sm:$0xff] }
 0x23f   : > { %1456 = vmatmul.bf16.gmra.mxu3 %v4949_v57  ;;  %1866 = vmatmul.bf16.gmra.mxu1 %v4916_v62 }
 0x240   : > { %1950 = vmatmul.bf16.gmra.mxu2 %v5108_v1  ;;  %v5118_v31 = vsel %vm2003_vm0, %v5784_v2, %v2014_v14  ;;  %2508 = vmatpush.bf16.msra.mxu1 %v4096_v9  ;;  %v5143_v9 = vpop.f32.mrf.mxu0 }
 0x242   : > { %v1408_v51 = vpop.f32.mrf.mxu3 }
 0x243   : > { %v1911_v56 = vpop.f32.mrf.mxu2  ;;  %v5125_v21 = vadd.f32 %v1408_v51, %v5013_v60 }
 0x244   : > { %v5127_v49 = vadd.f32 %v1911_v56, %v1823_v27  ;;  %v1829_v14 = vpop.f32.mrf.mxu1  ;;  %2509 = vmatpush.bf16.msra.mxu1 %v4095_v39  ;;  %v4094_v56 = vld [vmem:[%s5773_s3 + $0x200] sm:$0xff] }
 0x245   : > { %5825 = vst [vmem:[#allocation33_spill] sm:$0xff] %v5125_v21 }
 0x246   : > { %v5785_v2 = vrot.slane %v5127_v49, 7 }
 0x248   : > { %2510 = vmatpush.bf16.msra.mxu1 %v4094_v56  ;;  %v5165_v56 = vpop.f32.mrf.mxu0 }
 0x24a   : > { %v1410_v41 = vpop.f32.mrf.mxu3 }
 0x24b   : > { %2452 = vmatmul.bf16.gmra.mxu0 %v4695_v53  ;;  %v1913_v60 = vpop.f32.mrf.mxu2  ;;  %v5138_v27 = vadd.f32 %v1410_v41, %v5021_v32  ;;  %v4081_v53 = vld [vmem:[%s5773_s3 + $0x198] sm:$0xff] }
 0x24c   : > { %v1914_v51 = vadd.f32 %v1913_v60, %v1825_v5  ;;  %v1832_v11 = vpop.f32.mrf.mxu1  ;;  %2329 = vmatpush.bf16.msra.mxu3 %v4081_v53 }
 0x24d   : > { %5826 = vst [vmem:[#allocation34_spill] sm:$0xff] %v5138_v27  ;;  %v1830_v27 = vadd.f32 %v1829_v14, %v4929_v36  ;;  %v1833_v36 = vadd.f32 %v1832_v11, %v4943_v38  ;;  %v5198_v11 = vld [vmem:[#allocation2 + $0x88] sm:$0xff] }
 0x24e   : > { %v2017_v21 = vrot.slane %v1914_v51, 7 }
 0x24f   : > { %1461 = vmatmul.bf16.gmra.mxu3 %v4969_v44  ;;  %1871 = vmatmul.bf16.gmra.mxu1 %v4947_v25 }
 0x250   : > { %1955 = vmatmul.bf16.gmra.mxu2 %v5146_v47  ;;  %v5156_v32 = vsel %vm2003_vm0, %v5785_v2, %v2017_v21 }
 0x252   : > { %v1413_v39 = vpop.f32.mrf.mxu3 }
 0x253   : > { %v1916_v5 = vpop.f32.mrf.mxu2  ;;  %v5161_v41 = vadd.f32 %v1413_v39, %v5040_v35  ;;  %v5173_v39 = vld [vmem:[#allocation2 + $0x80] sm:$0xff] }
 0x254   : > { %v5163_v60 = vadd.f32 %v1916_v5, %v1828_v4  ;;  %v1834_v51 = vpop.f32.mrf.mxu1 }
 0x256   : > { %v5787_v13 = vrot.slane %v5163_v60, 7 }
 0x25a   : > { %v1415_v21 = vpop.f32.mrf.mxu3 }
 0x25b   : > { %2457 = vmatmul.bf16.gmra.mxu0 %v4703_v63  ;;  %v1918_v2 = vpop.f32.mrf.mxu2  ;;  %v5170_v44 = vadd.f32 %v1415_v21, %v5049_v43  ;;  %v5183_v43 = vpop.f32.mrf.mxu0  ;;  %v1835_v21 = vadd.f32 %v1834_v51, %v4959_v6  ;;  %v4109_v6 = vld [vmem:[%s5775_s5 + $0x38] sm:$0xff] }
 0x25c   : > { %v1919_v19 = vadd.f32 %v1918_v2, %v1830_v27  ;;  %v1837_v35 = vpop.f32.mrf.mxu1  ;;  %2905 = vmatpush.bf16.msra.mxu2 %v4109_v6 }
 0x25d   : > { %5827 = vst [vmem:[#allocation35_spill] sm:$0xff] %v5170_v44  ;;  %v1838_v51 = vadd.f32 %v1837_v35, %v4971_v45 }
 0x25e   : > { %v2020_v53 = vrot.slane %v1919_v19, 7 }
 0x25f   : > { %1466 = vmatmul.bf16.gmra.mxu3 %v4983_v59  ;;  %1876 = vmatmul.bf16.gmra.mxu1 %v4967_v37 }
 0x260   : > { %1960 = vmatmul.bf16.gmra.mxu2 %v5173_v39  ;;  %v5180_v63 = vsel %vm2003_vm0, %v5787_v13, %v2020_v53 }
 0x262   : > { %v1418_v2 = vpop.f32.mrf.mxu3 }
 0x263   : > { %v1921_v14 = vpop.f32.mrf.mxu2  ;;  %v5187_v27 = vadd.f32 %v1418_v2, %v5065_v58  ;;  %v5193_v13 = vpop.f32.mrf.mxu0 }
 0x264   : > { %v5189_v4 = vadd.f32 %v1921_v14, %v1833_v36  ;;  %v1839_v5 = vpop.f32.mrf.mxu1 }
 0x265   : > { %5828 = vst [vmem:[#allocation36_spill] sm:$0xff] %v5187_v27 }
 0x266   : > { %v5788_v58 = vrot.slane %v5189_v4, 7 }
 0x26a   : > { %v1420_v19 = vpop.f32.mrf.mxu3 }
 0x26b   : > { %2462 = vmatmul.bf16.gmra.mxu0 %v4720_v15  ;;  %v1923_v53 = vpop.f32.mrf.mxu2  ;;  %v5196_v44 = vadd.f32 %v1420_v19, %v5073_v16  ;;  %v4080_v15 = vld [vmem:[%s5773_s3 + $0x190] sm:$0xff]  ;;  %v5222_v27 = vpop.f32.mrf.mxu0 }
 0x26c   : > { %v1924_v38 = vadd.f32 %v1923_v53, %v1835_v21  ;;  %v1842_v36 = vpop.f32.mrf.mxu1  ;;  %2330 = vmatpush.bf16.msra.mxu3 %v4080_v15 }
 0x26d   : > { %5829 = vst [vmem:[#allocation37_spill] sm:$0xff] %v5196_v44 }
 0x26e   : > { %v2023_v2 = vrot.slane %v1924_v38, 7  ;;  %v5830_v38 = vrot.slane %v5015_v23, 7 }
 0x26f   : > { %1471 = vmatmul.bf16.gmra.mxu3 %v5007_v17  ;;  %2511 = vmatmul.bf16.vlgmr.msra.gmra.mxu1 %v4819_v0  ;;  %v1840_v0 = vadd.f32 %v1839_v5, %v4978_v18 }
 0x270   : > { %1965 = vmatmul.bf16.gmra.mxu2 %v5198_v11  ;;  %v5212_v16 = vsel %vm2003_vm0, %v5788_v58, %v2023_v2  ;;  %v2084_v44 = vsel %vm2003_vm0, 0.0, %v5830_v38 }
 0x272   : > { %v1432_v14 = vpop.f32.mrf.mxu3 }
 0x273   : > { %v1926_v21 = vpop.f32.mrf.mxu2  ;;  %v1433_v19 = vadd.f32 %v1432_v14, %v4738_v29 }
 0x274   : > { %v5217_v53 = vadd.f32 %v1926_v21, %v1838_v51  ;;  %v1844_v58 = vpop.f32.mrf.mxu1  ;;  %v5233_v21 = vpop.f32.mrf.mxu0 }
 0x275   : > { %v5224_v2 = vadd.f32 %v2084_v44, %v1433_v19  ;;  %v5831_v19 = vrot.slane %v5042_v42, 7 }
 0x276   : > { %v5790_v15 = vrot.slane %v5217_v53, 7 }
 0x277   : > { %v2085_v38 = vsel %vm2003_vm0, 0.0, %v5831_v19 }
 0x27a   : > { %v1434_v45 = vpop.f32.mrf.mxu3 }
 0x27b   : > { %2467 = vmatmul.bf16.gmra.mxu0 %v4759_v50  ;;  %v1928_v35 = vpop.f32.mrf.mxu2  ;;  %v1435_v6 = vadd.f32 %v1434_v45, %v4755_v46  ;;  %v1843_v46 = vadd.f32 %v1842_v36, %v4993_v52 }
 0x27c   : > { %v1929_v29 = vadd.f32 %v1928_v35, %v1840_v0  ;;  %v1847_v14 = vpop.f32.mrf.mxu1  ;;  %v5251_v35 = vpop.f32.mrf.mxu0 }
 0x27d   : > { %v5231_v23 = vadd.f32 %v5031_v40, %v1435_v6  ;;  %v1845_v6 = vadd.f32 %v1844_v58, %v5005_v24  ;;  %v5834_v24 = vld [vmem:[#allocation12_spill] sm:$0xff] }
 0x27e   : > { %v2026_v51 = vrot.slane %v1929_v29, 7 }
 0x27f   : > { %1476 = vmatmul.bf16.gmra.mxu3 %v5024_v33  ;;  %2516 = vmatmul.bf16.gmra.mxu1 %v4835_v10 }
 0x280   : > { %v5239_v50 = vsel %vm2003_vm0, %v5790_v15, %v2026_v51 }
 0x282   : > { %v1437_v44 = vpop.f32.mrf.mxu3 }
 0x283   : > { %v1931_v18 = vpop.f32.mrf.mxu2  ;;  %v1438_v40 = vadd.f32 %v1437_v44, %v4768_v61  ;;  %v4108_v44 = vld [vmem:[%s5775_s5 + $0x30] sm:$0xff] }
 0x284   : > { %v5244_v5 = vadd.f32 %v1931_v18, %v1843_v46  ;;  %v1849_v45 = vpop.f32.mrf.mxu1  ;;  %2906 = vmatpush.bf16.msra.mxu2 %v4108_v44  ;;  %v5274_v19 = vpop.f32.mrf.mxu0  ;;  %v5838_v44 = vld [vmem:[#allocation28_spill] sm:$0xff] }
 0x285   : > { %v5249_v0 = vadd.f32 %v2085_v38, %v1438_v40  ;;  %v5836_v38 = vld [vmem:[#allocation3_spill] sm:$0xff] }
 0x286   : > { %v5789_v29 = vrot.slane %v5244_v5, 7 }
 0x287   : > { %5832 = vst [vmem:[#allocation38_spill] sm:$0xff] %v5249_v0 }
 0x28a   : > { %v1439_v10 = vpop.f32.mrf.mxu3 }
 0x28b   : > { %2472 = vmatmul.bf16.gmra.mxu0 %v4786_v20  ;;  %v1933_v52 = vpop.f32.mrf.mxu2  ;;  %v1440_v36 = vadd.f32 %v1439_v10, %v4779_v12  ;;  %v4079_v20 = vld [vmem:[%s5773_s3 + $0x188] sm:$0xff] }
 0x28c   : > { %v1934_v61 = vadd.f32 %v1933_v52, %v1845_v6  ;;  %v1852_v46 = vpop.f32.mrf.mxu1  ;;  %2331 = vmatpush.bf16.msra.mxu3 %v4079_v20  ;;  %v5837_v52 = vrot.slane %v5067_v7, 7 }
 0x28d   : > { %v5258_v42 = vadd.f32 %v5061_v22, %v1440_v36  ;;  %v5835_v22 = vld [vmem:[#allocation27_spill] sm:$0xff] }
 0x28e   : > { %v2029_v51 = vrot.slane %v1934_v61, 7  ;;  %v1848_v58 = vadd.f32 %v1847_v14, %v5835_v22  ;;  %v2086_v36 = vsel %vm2003_vm0, 0.0, %v5837_v52  ;;  %v5840_v22 = vld [vmem:[#allocation4_spill] sm:$0xff] }
 0x28f   : > { %5833 = vst [vmem:[#allocation39_spill] sm:$0xff] %v5258_v42  ;;  %1481 = vmatmul.bf16.gmra.mxu3 %v5054_v30  ;;  %2521 = vmatmul.bf16.gmra.mxu1 %v5834_v24  ;;  %v1850_v24 = vadd.f32 %v1849_v45, %v5838_v44  ;;  %v5287_v42 = vpop.f32.mrf.mxu0  ;;  %v5843_v44 = vld [vmem:[#allocation6_spill] sm:$0xff] }
 0x290   : > { %v5270_v12 = vsel %vm2003_vm0, %v5789_v29, %v2029_v51  ;;  %v5839_v29 = vld [vmem:[#allocation5_spill] sm:$0xff] }
 0x292   : > { %v1442_v18 = vpop.f32.mrf.mxu3 }
 0x293   : > { %v1936_v40 = vpop.f32.mrf.mxu2  ;;  %v1443_v6 = vadd.f32 %v1442_v18, %v5836_v38  ;;  %v5842_v38 = vld [vmem:[#allocation29_spill] sm:$0xff] }
 0x294   : > { %v5277_v10 = vadd.f32 %v1936_v40, %v1848_v58  ;;  %v1854_v51 = vpop.f32.mrf.mxu1 }
 0x295   : > { %v5282_v61 = vadd.f32 %v2086_v36, %v1443_v6  ;;  %v1853_v6 = vadd.f32 %v1852_v46, %v5842_v38  ;;  %v5846_v38 = vld [vmem:[#allocation7_spill] sm:$0xff] }
 0x296   : > { %v5791_v58 = vrot.slane %v5277_v10, 7 }
 0x29a   : > { %v1444_v14 = vpop.f32.mrf.mxu3 }
 0x29b   : > { %2477 = vmatmul.bf16.gmra.mxu0 %v5839_v29  ;;  %v1938_v20 = vpop.f32.mrf.mxu2  ;;  %v1445_v15 = vadd.f32 %v1444_v14, %v5840_v22  ;;  %v5841_v29 = vld [vmem:[#allocation15_spill] sm:$0xff]  ;;  %v5309_v22 = vpop.f32.mrf.mxu0 }
 0x29c   : > { %v1939_v0 = vadd.f32 %v1938_v20, %v1850_v24  ;;  %v1857_v40 = vpop.f32.mrf.mxu1 }
 0x29d   : > { %v5291_v7 = vadd.f32 %v5085_v28, %v1445_v15  ;;  %v5844_v28 = vrot.slane %v5095_v3, 7 }
 0x29e   : > { %v2032_v18 = vrot.slane %v1939_v0, 7 }
 0x29f   : > { %1486 = vmatmul.bf16.gmra.mxu3 %v5076_v34  ;;  %2526 = vmatmul.bf16.gmra.mxu1 %v5841_v29  ;;  %v2087_v15 = vsel %vm2003_vm0, 0.0, %v5844_v28 }
 0x2a0   : > { %v5297_v45 = vsel %vm2003_vm0, %v5791_v58, %v2032_v18  ;;  %v1855_v18 = vadd.f32 %v1854_v51, %v5069_v54  ;;  %v5847_v51 = vld [vmem:[#allocation30_spill] sm:$0xff] }
 0x2a2   : > { %v1447_v52 = vpop.f32.mrf.mxu3 }
 0x2a3   : > { %v1941_v36 = vpop.f32.mrf.mxu2  ;;  %v1448_v24 = vadd.f32 %v1447_v52, %v5843_v44  ;;  %v4107_v44 = vld [vmem:[%s5775_s5 + $0x28] sm:$0xff] }
 0x2a4   : > { %v5302_v14 = vadd.f32 %v1941_v36, %v1853_v6  ;;  %v1859_v20 = vpop.f32.mrf.mxu1  ;;  %2907 = vmatpush.bf16.msra.mxu2 %v4107_v44 }
 0x2a5   : > { %v5307_v0 = vadd.f32 %v2087_v15, %v1448_v24 }
 0x2a6   : > { %v5792_v6 = vrot.slane %v5302_v14, 7 }
 0x2a7   : > { %5845 = vst [vmem:[#allocation12_spill] sm:$0xff] %v5307_v0 }
 0x2aa   : > { %v1449_v46 = vpop.f32.mrf.mxu3 }
 0x2ab   : > { %2482 = vmatmul.bf16.gmra.mxu0 %v4882_v8  ;;  %v1943_v29 = vpop.f32.mrf.mxu2  ;;  %v1450_v58 = vadd.f32 %v1449_v46, %v5846_v38  ;;  %v4078_v8 = vld [vmem:[%s5773_s3 + $0x180] sm:$0xff]  ;;  %v5849_v38 = vrot.slane %v5127_v49, 7 }
 0x2ac   : > { %v1944_v52 = vadd.f32 %v1943_v29, %v1855_v18  ;;  %v1862_v24 = vpop.f32.mrf.mxu1  ;;  %2332 = vmatpush.bf16.msra.mxu3 %v4078_v8  ;;  %v5848_v18 = vld [vmem:[#allocation8_spill] sm:$0xff] }
 0x2ad   : > { %v5316_v3 = vadd.f32 %v5118_v31, %v1450_v58  ;;  %v5331_v31 = vpop.f32.mrf.mxu0  ;;  %v1858_v58 = vadd.f32 %v1857_v40, %v5847_v51  ;;  %v5850_v51 = vld [vmem:[#allocation9_spill] sm:$0xff] }
 0x2ae   : > { %v2035_v36 = vrot.slane %v1944_v52, 7  ;;  %v2088_v52 = vsel %vm2003_vm0, 0.0, %v5849_v38 }
 0x2af   : > { %1491 = vmatmul.bf16.gmra.mxu3 %v5108_v1  ;;  %2531 = vmatmul.bf16.gmra.mxu1 %v4918_v55 }
 0x2b0   : > { %v5328_v54 = vsel %vm2003_vm0, %v5792_v6, %v2035_v36  ;;  %v1860_v36 = vadd.f32 %v1859_v20, %v5100_v48 }
 0x2b2   : > { %v1452_v28 = vpop.f32.mrf.mxu3 }
 0x2b3   : > { %v1946_v15 = vpop.f32.mrf.mxu2  ;;  %v1453_v46 = vadd.f32 %v1452_v28, %v5848_v18 }
 0x2b4   : > { %v5335_v29 = vadd.f32 %v1946_v15, %v1858_v58  ;;  %v1864_v55 = vpop.f32.mrf.mxu1 }
 0x2b5   : > { %v5340_v44 = vadd.f32 %v2088_v52, %v1453_v46  ;;  %v5344_v8 = vpop.f32.mrf.mxu0  ;;  %v5851_v46 = vld [vmem:[#allocation10_spill] sm:$0xff] }
 0x2b6   : > { %v2037_v58 = vrot.slane %v5335_v29, 7 }
 0x2ba   : > { %v1454_v6 = vpop.f32.mrf.mxu3 }
 0x2bb   : > { %2487 = vmatmul.bf16.gmra.mxu0 %v4916_v62  ;;  %v1948_v40 = vpop.f32.mrf.mxu2  ;;  %v1455_v0 = vadd.f32 %v1454_v6, %v5850_v51  ;;  %v1863_v62 = vadd.f32 %v1862_v24, %v5122_v26  ;;  %v1865_v51 = vadd.f32 %v1864_v55, %v5143_v9  ;;  %v5853_v24 = vld [vmem:[#allocation11_spill] sm:$0xff]  ;;  %v5854_v9 = vld [vmem:[#allocation22_spill] sm:$0xff] }
 0x2bc   : > { %v1949_v28 = vadd.f32 %v1948_v40, %v1860_v36  ;;  %v1867_v18 = vpop.f32.mrf.mxu1 }
 0x2bd   : > { %v5349_v49 = vadd.f32 %v5156_v32, %v1455_v0  ;;  %v5852_v32 = vrot.slane %v5163_v60, 7  ;;  %v5365_v36 = vpop.f32.mrf.mxu0 }
 0x2be   : > { %v2038_v15 = vrot.slane %v1949_v28, 7 }
 0x2bf   : > { %1496 = vmatmul.bf16.gmra.mxu3 %v5146_v47  ;;  %2536 = vmatmul.bf16.gmra.mxu1 %v4949_v57  ;;  %v2089_v0 = vsel %vm2003_vm0, 0.0, %v5852_v32 }
 0x2c0   : > { %v5355_v48 = vsel %vm2003_vm0, %v2037_v58, %v2038_v15 }
 0x2c2   : > { %v1457_v20 = vpop.f32.mrf.mxu3 }
 0x2c3   : > { %v1951_v6 = vpop.f32.mrf.mxu2  ;;  %v1458_v38 = vadd.f32 %v1457_v20, %v5851_v46  ;;  %v4106_v46 = vld [vmem:[%s5775_s5 + $0x20] sm:$0xff] }
 0x2c4   : > { %v5360_v52 = vadd.f32 %v1951_v6, %v1863_v62  ;;  %v1869_v20 = vpop.f32.mrf.mxu1  ;;  %2908 = vmatpush.bf16.msra.mxu2 %v4106_v46 }
 0x2c5   : > { %v5367_v40 = vadd.f32 %v2089_v0, %v1458_v38  ;;  %v5379_v38 = vpop.f32.mrf.mxu0  ;;  %v5855_v0 = vld [vmem:[#allocation13_spill] sm:$0xff] }
 0x2c6   : > { %v5793_v62 = vrot.slane %v5360_v52, 7 }
 0x2ca   : > { %v1459_v57 = vpop.f32.mrf.mxu3 }
 0x2cb   : > { %2492 = vmatmul.bf16.gmra.mxu0 %v4947_v25  ;;  %v1953_v26 = vpop.f32.mrf.mxu2  ;;  %v1460_v28 = vadd.f32 %v1459_v57, %v5853_v24 }
 0x2cc   : > { %v1954_v15 = vadd.f32 %v1953_v26, %v1865_v51  ;;  %v5856_v26 = vrot.slane %v5189_v4, 7 }
 0x2cd   : > { %v5374_v60 = vadd.f32 %v5180_v63, %v1460_v28  ;;  %v1868_v63 = vadd.f32 %v1867_v18, %v5165_v56  ;;  %v5397_v46 = vpop.f32.mrf.mxu0 }
 0x2ce   : > { %v2041_v6 = vrot.slane %v1954_v15, 7  ;;  %v2090_v24 = vsel %vm2003_vm0, 0.0, %v5856_v26  ;;  %v1872_v15 = vpop.f32.mrf.mxu1  ;;  %v5858_v26 = vld [vmem:[#allocation16_spill] sm:$0xff] }
 0x2cf   : > { %1501 = vmatmul.bf16.gmra.mxu3 %v5173_v39  ;;  %2541 = vmatmul.bf16.gmra.mxu1 %v5854_v9  ;;  %v5857_v9 = vld [vmem:[#allocation14_spill] sm:$0xff] }
 0x2d0   : > { %v5385_v25 = vsel %vm2003_vm0, %v5793_v62, %v2041_v6  ;;  %v1870_v6 = vadd.f32 %v1869_v20, %v5183_v43 }
 0x2d2   : > { %v1462_v55 = vpop.f32.mrf.mxu3 }
 0x2d3   : > { %v1956_v32 = vpop.f32.mrf.mxu2  ;;  %v1463_v51 = vadd.f32 %v1462_v55, %v5855_v0 }
 0x2d4   : > { %v5390_v57 = vadd.f32 %v1956_v32, %v1868_v63 }
 0x2d5   : > { %v5395_v28 = vadd.f32 %v2090_v24, %v1463_v51 }
 0x2d6   : > { %v5794_v63 = vrot.slane %v5390_v57, 7  ;;  %v1874_v43 = vpop.f32.mrf.mxu1 }
 0x2da   : > { %v1464_v56 = vpop.f32.mrf.mxu3 }
 0x2db   : > { %2497 = vmatmul.bf16.gmra.mxu0 %v4967_v37  ;;  %v1958_v18 = vpop.f32.mrf.mxu2  ;;  %v1465_v62 = vadd.f32 %v1464_v56, %v5857_v9  ;;  %v1873_v37 = vadd.f32 %v1872_v15, %v5193_v13 }
 0x2dc   : > { %v1959_v55 = vadd.f32 %v1958_v18, %v1870_v6  ;;  %v1875_v18 = vadd.f32 %v1874_v43, %v5222_v27 }
 0x2dd   : > { %v5404_v4 = vadd.f32 %v5212_v16, %v1465_v62  ;;  %v5859_v16 = vrot.slane %v5217_v53, 7  ;;  %v4105_v53 = vld [vmem:[%s5775_s5 + $0x18] sm:$0xff] }
 0x2de   : > { %v2044_v32 = vrot.slane %v1959_v55, 7  ;;  %v1877_v15 = vpop.f32.mrf.mxu1  ;;  %2909 = vmatpush.bf16.msra.mxu2 %v4105_v53 }
 0x2df   : > { %1506 = vmatmul.bf16.gmra.mxu3 %v5198_v11  ;;  %2546 = vmatmul.bf16.gmra.mxu1 %v4983_v59  ;;  %v2091_v62 = vsel %vm2003_vm0, 0.0, %v5859_v16  ;;  %v5860_v59 = vld [vmem:[#allocation17_spill] sm:$0xff]  ;;  %v1878_v43 = vadd.f32 %v1877_v15, %v5233_v21 }
 0x2e0   : > { %v5410_v0 = vsel %vm2003_vm0, %v5794_v63, %v2044_v32 }
 0x2e2   : > { %v1467_v20 = vpop.f32.mrf.mxu3 }
 0x2e3   : > { %v1961_v51 = vpop.f32.mrf.mxu2  ;;  %v1468_v24 = vadd.f32 %v1467_v20, %v5858_v26 }
 0x2e4   : > { %v5415_v6 = vadd.f32 %v1961_v51, %v1873_v37  ;;  %v4415_v51 = vld [vmem:[#allocation2] sm:$0xff] }
 0x2e5   : > { %v5420_v56 = vadd.f32 %v2091_v62, %v1468_v24  ;;  %v5861_v24 = vld [vmem:[#allocation18_spill] sm:$0xff] }
 0x2e6   : > { %v2046_v63 = vrot.slane %v5415_v6, 7  ;;  %v5879_v6 = vld [vmem:[#allocation36_spill] sm:$0xff] }
 0x2ea   : > { %v1469_v9 = vpop.f32.mrf.mxu3 }
 0x2eb   : > { %v1963_v55 = vpop.f32.mrf.mxu2  ;;  %v1470_v32 = vadd.f32 %v1469_v9, %v5860_v59  ;;  %v1879_v59 = vpop.f32.mrf.mxu1 }
 0x2ec   : > { %v1964_v13 = vadd.f32 %v1963_v55, %v1875_v18  ;;  %v5862_v18 = vrot.slane %v5244_v5, 7 }
 0x2ed   : > { %v5426_v20 = vadd.f32 %v5239_v50, %v1470_v32  ;;  %v1880_v32 = vadd.f32 %v1879_v59, %v5251_v35  ;;  %v5866_v59 = vld [vmem:[#allocation21_spill] sm:$0xff] }
 0x2ee   : > { %v2047_v37 = vrot.slane %v1964_v13, 7  ;;  %v2092_v9 = vsel %vm2003_vm0, 0.0, %v5862_v18 }
 0x2ef   : > { %2333 = vmatmul.bf16.vlgmr.msra.gmra.mxu3 %v4415_v51  ;;  %2551 = vmatmul.bf16.gmra.mxu1 %v5007_v17  ;;  %v5863_v17 = vld [vmem:[#allocation19_spill] sm:$0xff] }
 0x2f0   : > { %v5434_v27 = vsel %vm2003_vm0, %v2046_v63, %v2047_v37 }
 0x2f2   : > { %v1472_v26 = vpop.f32.mrf.mxu3 }
 0x2f3   : > { %v1966_v50 = vpop.f32.mrf.mxu2  ;;  %v1473_v16 = vadd.f32 %v1472_v26, %v5861_v24  ;;  %v4416_v26 = vld [vmem:[#allocation2 + $0x8] sm:$0xff] }
 0x2f4   : > { %v5439_v62 = vadd.f32 %v1966_v50, %v1878_v43  ;;  %v5864_v50 = vld [vmem:[#allocation20_spill] sm:$0xff] }
 0x2f5   : > { %v5444_v55 = vadd.f32 %v2092_v9, %v1473_v16  ;;  %v5865_v16 = vrot.slane %v5277_v10, 7 }
 0x2f6   : > { %v2049_v15 = vrot.slane %v5439_v62, 7 }
 0x2f7   : > { %v2093_v18 = vsel %vm2003_vm0, 0.0, %v5865_v16 }
 0x2fa   : > { %v1474_v13 = vpop.f32.mrf.mxu3 }
 0x2fb   : > { %v1968_v37 = vpop.f32.mrf.mxu2  ;;  %v1475_v53 = vadd.f32 %v1474_v13, %v5863_v17  ;;  %v5867_v17 = vld [vmem:[#allocation23_spill] sm:$0xff] }
 0x2fc   : > { %v1969_v21 = vadd.f32 %v1968_v37, %v1880_v32  ;;  %v4104_v37 = vld [vmem:[%s5775_s5 + $0x10] sm:$0xff] }
 0x2fd   : > { %v5450_v51 = vadd.f32 %v5270_v12, %v1475_v53  ;;  %2910 = vmatpush.bf16.msra.mxu2 %v4104_v37 }
 0x2fe   : > { %v2050_v43 = vrot.slane %v1969_v21, 7  ;;  %v5868_v21 = vrot.slane %v5302_v14, 7  ;;  %v2095_v14 = vsel %vm2003_vm0, 0.0, %v2037_v58  ;;  %v5872_v58 = vld [vmem:[#allocation31_spill] sm:$0xff] }
 0x2ff   : > { %2338 = vmatmul.bf16.gmra.mxu3 %v4416_v26  ;;  %2556 = vmatmul.bf16.gmra.mxu1 %v5024_v33  ;;  %v4417_v33 = vld [vmem:[#allocation2 + $0x10] sm:$0xff] }
 0x300   : > { %v5455_v5 = vsel %vm2003_vm0, %v2049_v15, %v2050_v43  ;;  %v2094_v43 = vsel %vm2003_vm0, 0.0, %v5868_v21  ;;  %v4419_v21 = vld [vmem:[#allocation2 + $0x20] sm:$0xff] }
 0x302   : > { %v1477_v35 = vpop.f32.mrf.mxu3 }
 0x303   : > { %v1478_v24 = vadd.f32 %v1477_v35, %v5864_v50  ;;  %v5869_v50 = vld [vmem:[#allocation24_spill] sm:$0xff] }
 0x305   : > { %v5462_v9 = vadd.f32 %v2093_v18, %v1478_v24  ;;  %v4418_v18 = vld [vmem:[#allocation2 + $0x18] sm:$0xff] }
 0x30a   : > { %v1479_v12 = vpop.f32.mrf.mxu3 }
 0x30b   : > { %v1480_v32 = vadd.f32 %v1479_v12, %v5866_v59  ;;  %v5870_v12 = vld [vmem:[#allocation25_spill] sm:$0xff] }
 0x30d   : > { %v5466_v13 = vadd.f32 %v5297_v45, %v1480_v32  ;;  %v5478_v45 = vpop.f32.mrf.mxu1 }
 0x30f   : > { %2343 = vmatmul.bf16.gmra.mxu3 %v4417_v33  ;;  %2561 = vmatmul.bf16.gmra.mxu1 %v5054_v30 }
 0x312   : > { %v1482_v10 = vpop.f32.mrf.mxu3 }
 0x313   : > { %v1483_v53 = vadd.f32 %v1482_v10, %v5867_v17  ;;  %v5871_v10 = vld [vmem:[#allocation26_spill] sm:$0xff] }
 0x315   : > { %v5476_v26 = vadd.f32 %v2094_v43, %v1483_v53  ;;  %v2514_v32 = vpop.f32.mrf.mxu1 }
 0x31a   : > { %v1484_v35 = vpop.f32.mrf.mxu3 }
 0x31b   : > { %v1485_v24 = vadd.f32 %v1484_v35, %v5869_v50  ;;  %v5873_v35 = vrot.slane %v5360_v52, 7  ;;  %v5875_v52 = vld [vmem:[#allocation33_spill] sm:$0xff] }
 0x31d   : > { %v5482_v16 = vadd.f32 %v5328_v54, %v1485_v24  ;;  %v5498_v53 = vpop.f32.mrf.mxu1  ;;  %v2096_v50 = vsel %vm2003_vm0, 0.0, %v5873_v35 }
 0x31f   : > { %2348 = vmatmul.bf16.gmra.mxu3 %v4418_v18  ;;  %2566 = vmatmul.bf16.gmra.mxu1 %v5076_v34  ;;  %v4103_v34 = vld [vmem:[%s5775_s5 + $0x8] sm:$0xff] }
 0x320   : > { %2911 = vmatpush.bf16.msra.mxu2 %v4103_v34 }
 0x322   : > { %v1487_v30 = vpop.f32.mrf.mxu3 }
 0x323   : > { %v1488_v59 = vadd.f32 %v1487_v30, %v5870_v12  ;;  %v5874_v30 = vld [vmem:[#allocation32_spill] sm:$0xff] }
 0x325   : > { %v5489_v37 = vadd.f32 %v2095_v14, %v1488_v59  ;;  %v5507_v24 = vpop.f32.mrf.mxu1  ;;  %v4420_v14 = vld [vmem:[#allocation2 + $0x28] sm:$0xff] }
 0x32a   : > { %v1489_v33 = vpop.f32.mrf.mxu3 }
 0x32b   : > { %v1490_v17 = vadd.f32 %v1489_v33, %v5871_v10 }
 0x32d   : > { %v5493_v54 = vadd.f32 %v5355_v48, %v1490_v17  ;;  %v5876_v17 = vrot.slane %v5390_v57, 7 }
 0x32f   : > { %2353 = vmatmul.bf16.gmra.mxu3 %v4419_v21  ;;  %2571 = vmatmul.bf16.gmra.mxu1 %v5108_v1  ;;  %v5514_v1 = vpop.f32.mrf.mxu1  ;;  %v2097_v34 = vsel %vm2003_vm0, 0.0, %v5876_v17  ;;  %v4422_v17 = vld [vmem:[#allocation2 + $0x38] sm:$0xff] }
 0x332   : > { %v1492_v29 = vpop.f32.mrf.mxu3 }
 0x333   : > { %v1493_v43 = vadd.f32 %v1492_v29, %v5872_v58  ;;  %v5877_v58 = vld [vmem:[#allocation34_spill] sm:$0xff] }
 0x335   : > { %v5505_v48 = vadd.f32 %v2096_v50, %v1493_v43  ;;  %v4421_v50 = vld [vmem:[#allocation2 + $0x30] sm:$0xff] }
 0x33a   : > { %v1494_v18 = vpop.f32.mrf.mxu3 }
 0x33b   : > { %v1495_v12 = vadd.f32 %v1494_v18, %v5874_v30  ;;  %v2098_v30 = vsel %vm2003_vm0, 0.0, %v2046_v63  ;;  %v2099_v63 = vsel %vm2003_vm0, 0.0, %v2049_v15 }
 0x33d   : > { %v5511_v59 = vadd.f32 %v5385_v25, %v1495_v12  ;;  %v5523_v25 = vpop.f32.mrf.mxu1 }
 0x33f   : > { %2358 = vmatmul.bf16.gmra.mxu3 %v4420_v14  ;;  %2576 = vmatmul.bf16.gmra.mxu1 %v5146_v47  ;;  %v4102_v47 = vld [vmem:[%s5775_s5] sm:$0xff] }
 0x340   : > { %2912 = vmatpush.bf16.msra.mxu2 %v4102_v47 }
 0x342   : > { %v1497_v33 = vpop.f32.mrf.mxu3 }
 0x343   : > { %v1498_v10 = vadd.f32 %v1497_v33, %v5875_v52  ;;  %v5878_v33 = vld [vmem:[#allocation35_spill] sm:$0xff] }
 0x345   : > { %v5520_v21 = vadd.f32 %v2097_v34, %v1498_v10 }
 0x34a   : > { %v1499_v29 = vpop.f32.mrf.mxu3 }
 0x34b   : > { %v1500_v43 = vadd.f32 %v1499_v29, %v5877_v58 }
 0x34d   : > { %v5526_v35 = vadd.f32 %v5410_v0, %v1500_v43  ;;  %v5538_v0 = vpop.f32.mrf.mxu1  ;;  %v5880_v43 = vld [vmem:[#allocation37_spill] sm:$0xff] }
 0x34f   : > { %2363 = vmatmul.bf16.gmra.mxu3 %v4421_v50  ;;  %2581 = vmatmul.bf16.gmra.mxu1 %v5173_v39  ;;  %v4423_v50 = vld [vmem:[#allocation2 + $0x40] sm:$0xff] }
 0x352   : > { %v1502_v57 = vpop.f32.mrf.mxu3 }
 0x353   : > { %v1503_v18 = vadd.f32 %v1502_v57, %v5161_v41 }
 0x355   : > { %v5536_v12 = vadd.f32 %v2098_v30, %v1503_v18  ;;  %v5544_v39 = vpop.f32.mrf.mxu1 }
 0x35a   : > { %v1504_v14 = vpop.f32.mrf.mxu3 }
 0x35b   : > { %v1505_v52 = vadd.f32 %v1504_v14, %v5878_v33 }
 0x35d   : > { %v5542_v10 = vadd.f32 %v5434_v27, %v1505_v52  ;;  %v4424_v52 = vld [vmem:[#allocation2 + $0x48] sm:$0xff] }
 0x35f   : > { %2368 = vmatmul.bf16.gmra.mxu3 %v4422_v17  ;;  %2586 = vmatmul.bf16.gmra.mxu1 %v5198_v11 }
 0x362   : > { %v1507_v41 = vpop.f32.mrf.mxu3 }
 0x363   : > { %v1508_v34 = vadd.f32 %v1507_v41, %v5879_v6 }
 0x365   : > { %v5551_v29 = vadd.f32 %v2099_v63, %v1508_v34 }
 0x36a   : > { %v1509_v58 = vpop.f32.mrf.mxu3 }
 0x36b   : > { %v1510_v47 = vadd.f32 %v1509_v58, %v5880_v43 }
 0x36d   : > { %v5555_v27 = vadd.f32 %v5455_v5, %v1510_v47  ;;  %v5563_v5 = vld [vmem:[%s5774_s4] ss:$0 sm:$0xff]  ;;  %v5574_v47 = vpop.f32.mrf.mxu1 }
 0x36f   : > { %2373 = vmatmul.bf16.gmra.mxu3 %v4423_v50 }
 0x372   : > { %v2334_v57 = vpop.f32.mrf.mxu3 }
 0x373   : > { %v2424_v11 = vadd.f32 %v5274_v19, %v2334_v57 }
 0x375   : > { %v2513_v30 = vadd.f32 %v5478_v45, %v2424_v11 }
 0x377   : > { %v2625_v15 = vrot.slane %v2513_v30, 1 }
 0x37a   : > { %v2336_v18 = vpop.f32.mrf.mxu3 }
 0x37b   : > { %v2426_v62 = vadd.f32 %v5287_v42, %v2336_v18 }
 0x37d   : > { %v2515_v14 = vadd.f32 %v2514_v32, %v2426_v62  ;;  %v5569_v32 = vpop.f32.mrf.mxu0 }
 0x37f   : > { %v2626_v33 = vrot.slane %v2515_v14, 1  ;;  %2378 = vmatmul.bf16.gmra.mxu3 %v4424_v52  ;;  %v4425_v14 = vld [vmem:[#allocation2 + $0x50] sm:$0xff] }
 0x380   : > { %v5881_v52 = vld [vmem:[#allocation39_spill] sm:$0xff] }
 0x381   : > { %v2627_v17 = vsel %vm2624_vm1, %v2625_v15, %v2626_v33  ;;  %v2705_v19 = vsel %vm2624_vm1, %v2626_v33, 0.0  ;;  %v2534_v33 = vpop.f32.mrf.mxu1 }
 0x382   : > { %v2721_v41 = vadd.f32 %v2627_v17, %v5224_v2  ;;  %v2722_v45 = vadd.f32 %v2705_v19, %v5231_v23  ;;  %v2339_v42 = vpop.f32.mrf.mxu3 }
 0x383   : > { %v2429_v43 = vadd.f32 %v5309_v22, %v2339_v42 }
 0x384   : > { %v2757_v6 = vadd.f32 %v5563_v5, %v2721_v41  ;;  %v2758_v34 = vadd.f32 %v5563_v5, %v2722_v45  ;;  %v5882_v41 = vld [vmem:[#allocation38_spill] sm:$0xff] }
 0x385   : > { %v2518_v2 = vadd.f32 %v5498_v53, %v2429_v43  ;;  %v5579_v18 = vpop.f32.mrf.mxu0 }
 0x386   : > { %v2789_v63 = vmax.f32 %v2757_v6, 0.0  ;;  %v2790_v58 = vmax.f32 %v2758_v34, 0.0 }
 0x387   : > { %v2628_v30 = vrot.slane %v2518_v2, 1 }
 0x388   : > { %v2821_v50 = vpack.c.bf16 %v2790_v58, %v2789_v63 }
 0x38a   : > { %v2341_v57 = vpop.f32.mrf.mxu3  ;;  %2913 = vmatmul.bf16.vlgmr.msra.gmra.mxu2 %v2821_v50 }
 0x38b   : > { %v2431_v23 = vadd.f32 %v5331_v31, %v2341_v57  ;;  %v5592_v57 = vpop.f32.mrf.mxu1 }
 0x38d   : > { %v2520_v11 = vadd.f32 %v5507_v24, %v2431_v23  ;;  %v5588_v34 = vpop.f32.mrf.mxu0 }
 0x38f   : > { %v2629_v62 = vrot.slane %v2520_v11, 1  ;;  %2383 = vmatmul.bf16.gmra.mxu3 %v4425_v14 }
 0x391   : > { %v2630_v15 = vsel %vm2624_vm1, %v2628_v30, %v2629_v62  ;;  %v2706_v22 = vsel %vm2624_vm1, %v2629_v62, 0.0  ;;  %v4426_v30 = vld [vmem:[#allocation2 + $0x58] sm:$0xff] }
 0x392   : > { %v2724_v17 = vadd.f32 %v2706_v22, %v5881_v52  ;;  %v2344_v19 = vpop.f32.mrf.mxu3  ;;  %v2723_v53 = vadd.f32 %v2630_v15, %v5882_v41 }
 0x393   : > { %v2434_v6 = vadd.f32 %v5344_v8, %v2344_v19 }
 0x394   : > { %v2759_v31 = vadd.f32 %v5563_v5, %v2723_v53  ;;  %v2760_v24 = vadd.f32 %v5563_v5, %v2724_v17  ;;  %v2539_v17 = vpop.f32.mrf.mxu1 }
 0x395   : > { %v2523_v43 = vadd.f32 %v5514_v1, %v2434_v6  ;;  %v2450_v14 = vpop.f32.mrf.mxu0 }
 0x396   : > { %v2791_v45 = vmax.f32 %v2759_v31, 0.0  ;;  %v2792_v42 = vmax.f32 %v2760_v24, 0.0 }
 0x397   : > { %v2631_v23 = vrot.slane %v2523_v43, 1 }
 0x398   : > { %v2822_v63 = vpack.c.bf16 %v2792_v42, %v2791_v45 }
 0x39a   : > { %v2346_v58 = vpop.f32.mrf.mxu3  ;;  %2918 = vmatmul.bf16.gmra.mxu2 %v2822_v63  ;;  %v4427_v63 = vld [vmem:[#allocation2 + $0x60] sm:$0xff] }
 0x39b   : > { %v2436_v50 = vadd.f32 %v5365_v36, %v2346_v58 }
 0x39c   : > { %v2542_v58 = vpop.f32.mrf.mxu1 }
 0x39d   : > { %v2525_v2 = vadd.f32 %v5523_v25, %v2436_v50 }
 0x39f   : > { %v2632_v11 = vrot.slane %v2525_v2, 1  ;;  %2388 = vmatmul.bf16.gmra.mxu3 %v4426_v30 }
 0x3a1   : > { %v2633_v62 = vsel %vm2624_vm1, %v2631_v23, %v2632_v11  ;;  %v2707_v8 = vsel %vm2624_vm1, %v2632_v11, 0.0  ;;  %v5883_v23 = vld [vmem:[#allocation12_spill] sm:$0xff] }
 0x3a2   : > { %v2726_v15 = vadd.f32 %v2707_v8, %v5291_v7  ;;  %v2349_v22 = vpop.f32.mrf.mxu3  ;;  %v2725_v1 = vadd.f32 %v2633_v62, %v5282_v61  ;;  %v5604_v7 = vpop.f32.mrf.mxu0 }
 0x3a3   : > { %v2439_v41 = vadd.f32 %v5379_v38, %v2349_v22 }
 0x3a4   : > { %v2761_v36 = vadd.f32 %v5563_v5, %v2725_v1  ;;  %v2762_v52 = vadd.f32 %v5563_v5, %v2726_v15  ;;  %v2544_v22 = vpop.f32.mrf.mxu1 }
 0x3a5   : > { %v2528_v24 = vadd.f32 %v5538_v0, %v2439_v41  ;;  %v4428_v41 = vld [vmem:[#allocation2 + $0x68] sm:$0xff] }
 0x3a6   : > { %v2793_v25 = vmax.f32 %v2761_v36, 0.0  ;;  %v2794_v19 = vmax.f32 %v2762_v52, 0.0 }
 0x3a7   : > { %v2634_v42 = vrot.slane %v2528_v24, 1 }
 0x3a8   : > { %v2823_v53 = vpack.c.bf16 %v2794_v19, %v2793_v25 }
 0x3aa   : > { %v2351_v31 = vpop.f32.mrf.mxu3  ;;  %2923 = vmatmul.bf16.gmra.mxu2 %v2823_v53  ;;  %v2455_v30 = vpop.f32.mrf.mxu0 }
 0x3ab   : > { %v2441_v45 = vadd.f32 %v5397_v46, %v2351_v31 }
 0x3ad   : > { %v2530_v61 = vadd.f32 %v5544_v39, %v2441_v45 }
 0x3af   : > { %v2635_v6 = vrot.slane %v2530_v61, 1  ;;  %2393 = vmatmul.bf16.gmra.mxu3 %v4427_v63 }
 0x3b1   : > { %v2636_v43 = vsel %vm2624_vm1, %v2634_v42, %v2635_v6  ;;  %v2708_v38 = vsel %vm2624_vm1, %v2635_v6, 0.0  ;;  %v2547_v42 = vpop.f32.mrf.mxu1 }
 0x3b2   : > { %v2728_v50 = vadd.f32 %v2708_v38, %v5316_v3  ;;  %v2354_v2 = vpop.f32.mrf.mxu3  ;;  %v2727_v0 = vadd.f32 %v2636_v43, %v5883_v23  ;;  %v2458_v53 = vpop.f32.mrf.mxu0 }
 0x3b3   : > { %v2444_v8 = vadd.f32 %v5569_v32, %v2354_v2 }
 0x3b4   : > { %v2763_v46 = vadd.f32 %v5563_v5, %v2727_v0  ;;  %v2764_v11 = vadd.f32 %v5563_v5, %v2728_v50 }
 0x3b5   : > { %v2533_v36 = vadd.f32 %v5574_v47, %v2444_v8 }
 0x3b6   : > { %v2795_v39 = vmax.f32 %v2763_v46, 0.0  ;;  %v2796_v62 = vmax.f32 %v2764_v11, 0.0  ;;  %v4429_v11 = vld [vmem:[#allocation2 + $0x70] sm:$0xff] }
 0x3b7   : > { %v2637_v25 = vrot.slane %v2533_v36, 1 }
 0x3b8   : > { %v2824_v15 = vpack.c.bf16 %v2796_v62, %v2795_v39 }
 0x3b9   : > { %v2549_v0 = vpop.f32.mrf.mxu1 }
 0x3ba   : > { %v2356_v1 = vpop.f32.mrf.mxu3  ;;  %2928 = vmatmul.bf16.gmra.mxu2 %v2824_v15  ;;  %v2460_v38 = vpop.f32.mrf.mxu0 }
 0x3bb   : > { %v2446_v3 = vadd.f32 %v5579_v18, %v2356_v1 }
 0x3bd   : > { %v2535_v52 = vadd.f32 %v2534_v33, %v2446_v3 }
 0x3bf   : > { %v2638_v19 = vrot.slane %v2535_v52, 1  ;;  %2398 = vmatmul.bf16.gmra.mxu3 %v4428_v41 }
 0x3c1   : > { %v2639_v31 = vsel %vm2624_vm1, %v2637_v25, %v2638_v19  ;;  %v2709_v24 = vsel %vm2624_vm1, %v2638_v19, 0.0  ;;  %v2552_v52 = vpop.f32.mrf.mxu1 }
 0x3c2   : > { %v2730_v32 = vadd.f32 %v2709_v24, %v5349_v49  ;;  %v2359_v45 = vpop.f32.mrf.mxu3  ;;  %v2729_v61 = vadd.f32 %v2639_v31, %v5340_v44  ;;  %v2463_v1 = vpop.f32.mrf.mxu0 }
 0x3c3   : > { %v2449_v63 = vadd.f32 %v5588_v34, %v2359_v45 }
 0x3c4   : > { %v2765_v47 = vadd.f32 %v5563_v5, %v2729_v61  ;;  %v2766_v18 = vadd.f32 %v5563_v5, %v2730_v32 }
 0x3c5   : > { %v2538_v2 = vadd.f32 %v5592_v57, %v2449_v63 }
 0x3c6   : > { %v2797_v33 = vmax.f32 %v2765_v47, 0.0  ;;  %v2798_v6 = vmax.f32 %v2766_v18, 0.0 }
 0x3c7   : > { %v2640_v46 = vrot.slane %v2538_v2, 1 }
 0x3c8   : > { %v2825_v43 = vpack.c.bf16 %v2798_v6, %v2797_v33 }
 0x3c9   : > { %v2554_v18 = vpop.f32.mrf.mxu1 }
 0x3ca   : > { %v2361_v50 = vpop.f32.mrf.mxu3  ;;  %2933 = vmatmul.bf16.gmra.mxu2 %v2825_v43 }
 0x3cb   : > { %v2451_v23 = vadd.f32 %v2450_v14, %v2361_v50 }
 0x3cd   : > { %v2540_v49 = vadd.f32 %v2539_v17, %v2451_v23 }
 0x3cf   : > { %v2641_v44 = vrot.slane %v2540_v49, 1  ;;  %2403 = vmatmul.bf16.gmra.mxu3 %v4429_v11 }
 0x3d1   : > { %v2642_v39 = vsel %vm2624_vm1, %v2640_v46, %v2641_v44  ;;  %v2710_v62 = vsel %vm2624_vm1, %v2641_v44, 0.0  ;;  %v2557_v44 = vpop.f32.mrf.mxu1 }
 0x3d2   : > { %v2732_v8 = vadd.f32 %v2710_v62, %v5374_v60  ;;  %v2364_v34 = vpop.f32.mrf.mxu3  ;;  %v2731_v15 = vadd.f32 %v2642_v39, %v5367_v40  ;;  %v2465_v60 = vpop.f32.mrf.mxu0  ;;  %v4430_v40 = vld [vmem:[#allocation2 + $0x78] sm:$0xff] }
 0x3d3   : > { %v2454_v3 = vadd.f32 %v5604_v7, %v2364_v34 }
 0x3d4   : > { %v2767_v36 = vadd.f32 %v5563_v5, %v2731_v15  ;;  %v2768_v57 = vadd.f32 %v5563_v5, %v2732_v8 }
 0x3d5   : > { %v2543_v41 = vadd.f32 %v2542_v58, %v2454_v3 }
 0x3d6   : > { %v2799_v14 = vmax.f32 %v2767_v36, 0.0  ;;  %v2800_v17 = vmax.f32 %v2768_v57, 0.0 }
 0x3d7   : > { %v2643_v32 = vrot.slane %v2543_v41, 1 }
 0x3d8   : > { %v2826_v25 = vpack.c.bf16 %v2800_v17, %v2799_v14 }
 0x3da   : > { %v2366_v19 = vpop.f32.mrf.mxu3  ;;  %2938 = vmatmul.bf16.gmra.mxu2 %v2826_v25  ;;  %v2468_v50 = vpop.f32.mrf.mxu0 }
 0x3db   : > { %v2456_v31 = vadd.f32 %v2455_v30, %v2366_v19 }
 0x3dd   : > { %v2545_v24 = vadd.f32 %v2544_v22, %v2456_v31 }
 0x3df   : > { %v2644_v45 = vrot.slane %v2545_v24, 1  ;;  %2408 = vmatmul.bf16.gmra.mxu3 %v4430_v40 }
 0x3e1   : > { %v2645_v61 = vsel %vm2624_vm1, %v2643_v32, %v2644_v45  ;;  %v2711_v47 = vsel %vm2624_vm1, %v2644_v45, 0.0 }
 0x3e2   : > { %v2734_v33 = vadd.f32 %v2711_v47, %v5404_v4  ;;  %v2369_v7 = vpop.f32.mrf.mxu3  ;;  %v2733_v6 = vadd.f32 %v2645_v61, %v5395_v28  ;;  %v2470_v8 = vpop.f32.mrf.mxu0 }
 0x3e3   : > { %v2459_v43 = vadd.f32 %v2458_v53, %v2369_v7 }
 0x3e4   : > { %v2769_v63 = vadd.f32 %v5563_v5, %v2733_v6  ;;  %v2770_v58 = vadd.f32 %v5563_v5, %v2734_v33 }
 0x3e5   : > { %v2548_v49 = vadd.f32 %v2547_v42, %v2459_v43  ;;  %v2559_v42 = vpop.f32.mrf.mxu1 }
 0x3e6   : > { %v2801_v30 = vmax.f32 %v2769_v63, 0.0  ;;  %v2802_v22 = vmax.f32 %v2770_v58, 0.0 }
 0x3e7   : > { %v2646_v39 = vrot.slane %v2548_v49, 1  ;;  %v4191_v49 = vld [vmem:[%s4520_s22] sm:$0xff]  }
 0x3e8   : > { %v2827_v2 = vpack.c.bf16 %v2802_v22, %v2801_v30 }
 0x3ea   : > { %v2371_v23 = vpop.f32.mrf.mxu3  ;;  %2943 = vmatmul.bf16.gmra.mxu2 %v2827_v2  ;;  %v2473_v41 = vpop.f32.mrf.mxu0 }
 0x3eb   : > { %v2461_v46 = vadd.f32 %v2460_v38, %v2371_v23 }
 0x3ed   : > { %v2550_v11 = vadd.f32 %v2549_v0, %v2461_v46  ;;  %v2562_v32 = vpop.f32.mrf.mxu1 }
 0x3ef   : > { %v2647_v4 = vrot.slane %v2550_v11, 1 }
 0x3f1   : > { %v2648_v62 = vsel %vm2624_vm1, %v2646_v39, %v2647_v4  ;;  %v2712_v28 = vsel %vm2624_vm1, %v2647_v4, 0.0  ;;  %v4192_v4 = vunpack.c.l.bf16 %v4191_v49 }
 0x3f2   : > { %v2736_v34 = vadd.f32 %v2712_v28, %v5426_v20  ;;  %v2374_v15 = vpop.f32.mrf.mxu3  ;;  %v2735_v53 = vadd.f32 %v2648_v62, %v5420_v56 }
 0x3f3   : > { %v2464_v0 = vadd.f32 %v2463_v1, %v2374_v15 }
 0x3f4   : > { %v2771_v36 = vadd.f32 %v5563_v5, %v2735_v53  ;;  %v2772_v57 = vadd.f32 %v5563_v5, %v2736_v34  ;;  %v4193_v34 = vunpack.c.h.bf16 %v4191_v49 }
 0x3f5   : > { %v2553_v25 = vadd.f32 %v2552_v52, %v2464_v0  ;;  %v2475_v52 = vpop.f32.mrf.mxu0  ;;  %v2564_v63 = vpop.f32.mrf.mxu1 }
 0x3f6   : > { %v2803_v38 = vmax.f32 %v2771_v36, 0.0  ;;  %v2804_v14 = vmax.f32 %v2772_v57, 0.0 }
 0x3f7   : > { %v2649_v24 = vrot.slane %v2553_v25, 1 }
 0x3f8   : > { %v2828_v17 = vpack.c.bf16 %v2804_v14, %v2803_v38 }
 0x3fa   : > { %v2376_v3 = vpop.f32.mrf.mxu3  ;;  %2948 = vmatmul.bf16.gmra.mxu2 %v2828_v17 }
 0x3fb   : > { %v2466_v19 = vadd.f32 %v2465_v60, %v2376_v3 }
 0x3fd   : > { %v2555_v31 = vadd.f32 %v2554_v18, %v2466_v19  ;;  %v2478_v46 = vpop.f32.mrf.mxu0 }
 0x3ff   : > { %v2650_v20 = vrot.slane %v2555_v31, 1 }
 0x401   : > { %v2651_v56 = vsel %vm2624_vm1, %v2649_v24, %v2650_v20  ;;  %v2713_v45 = vsel %vm2624_vm1, %v2650_v20, 0.0 }
 0x402   : > { %v2738_v40 = vadd.f32 %v2713_v45, %v5450_v51  ;;  %v2379_v61 = vpop.f32.mrf.mxu3  ;;  %v2737_v47 = vadd.f32 %v2651_v56, %v5444_v55  ;;  %v5652_v55 = vld [vmem:[%s5776_s6] ss:$0 sm:$0xff] }
 0x403   : > { %v2469_v7 = vadd.f32 %v2468_v50, %v2379_v61 }
 0x404   : > { %v2773_v1 = vadd.f32 %v5563_v5, %v2737_v47  ;;  %v2774_v33 = vadd.f32 %v5563_v5, %v2738_v40  ;;  %v4349_v47 = vld [vmem:[%s4520_s22 + $0x8] sm:$0xff]  }
 0x405   : > { %v2558_v30 = vadd.f32 %v2557_v44, %v2469_v7  ;;  %v2480_v3 = vpop.f32.mrf.mxu0 }
 0x406   : > { %v2805_v60 = vmax.f32 %v2773_v1, 0.0  ;;  %v2806_v18 = vmax.f32 %v2774_v33, 0.0 }
 0x407   : > { %v2652_v2 = vrot.slane %v2558_v30, 1 }
 0x408   : > { %v2829_v6 = vpack.c.bf16 %v2806_v18, %v2805_v60  ;;  %v4196_v18 = vunpack.c.l.bf16 %v4349_v47 }
 0x40a   : > { %v2381_v58 = vpop.f32.mrf.mxu3  ;;  %2953 = vmatmul.bf16.gmra.mxu2 %v2829_v6 }
 0x40b   : > { %v2471_v22 = vadd.f32 %v2470_v8, %v2381_v58  ;;  %v2567_v8 = vpop.f32.mrf.mxu1 }
 0x40d   : > { %v2560_v43 = vadd.f32 %v2559_v42, %v2471_v22  ;;  %v2914_v51 = vpop.f32.mrf.mxu2  ;;  %v2483_v6 = vpop.f32.mrf.mxu0 }
 0x40e   : > { %v2915_v44 = vadd.f32 %v5652_v55, %v2914_v51 }
 0x40f   : > { %v2653_v23 = vrot.slane %v2560_v43, 1 }
 0x410   : > { %v3058_v57 = vadd.f32 %v4192_v4, %v2915_v44 }
 0x411   : > { %v2654_v11 = vsel %vm2624_vm1, %v2652_v2, %v2653_v23  ;;  %v2714_v50 = vsel %vm2624_vm1, %v2653_v23, 0.0 }
 0x412   : > { %v2740_v39 = vadd.f32 %v2714_v50, %v5466_v13  ;;  %v2384_v62 = vpop.f32.mrf.mxu3  ;;  %v2739_v28 = vadd.f32 %v2654_v11, %v5462_v9  ;;  %v3090_v25 = vmax.f32 %v3058_v57, 0.0 }
 0x413   : > { %v2474_v13 = vadd.f32 %v2473_v41, %v2384_v62  ;;  %v2569_v45 = vpop.f32.mrf.mxu1 }
 0x414   : > { %v2775_v15 = vadd.f32 %v5563_v5, %v2739_v28  ;;  %v2776_v53 = vadd.f32 %v5563_v5, %v2740_v39 }
 0x415   : > { %v2916_v36 = vpop.f32.mrf.mxu2  ;;  %v2563_v31 = vadd.f32 %v2562_v32, %v2474_v13 }
 0x416   : > { %v2917_v42 = vadd.f32 %v5652_v55, %v2916_v36  ;;  %v2807_v38 = vmax.f32 %v2775_v15, 0.0  ;;  %v2808_v14 = vmax.f32 %v2776_v53, 0.0  ;;  %v2485_v53 = vpop.f32.mrf.mxu0 }
 0x417   : > { %v2655_v40 = vrot.slane %v2563_v31, 1 }
 0x418   : > { %v3059_v0 = vadd.f32 %v4193_v34, %v2917_v42  ;;  %v2830_v17 = vpack.c.bf16 %v2808_v14, %v2807_v38  ;;  %v4350_v42 = vld [vmem:[%s4520_s22 + $0x10] sm:$0xff]  }
 0x41a   : > { %v3091_v9 = vmax.f32 %v3059_v0, 0.0  ;;  %v2386_v19 = vpop.f32.mrf.mxu3  ;;  %2958 = vmatmul.bf16.gmra.mxu2 %v2830_v17  ;;  %v4200_v17 = vunpack.c.l.bf16 %v4350_v42 }
 0x41b   : > { %v2476_v24 = vadd.f32 %v2475_v52, %v2386_v19  ;;  %v2572_v49 = vpop.f32.mrf.mxu1 }
 0x41c   : > { %v4257_v20 = vpack.c.bf16 %v3091_v9, %v3090_v25  ;;  %v4201_v25 = vunpack.c.h.bf16 %v4350_v42 }
 0x41d   : > { %v2565_v56 = vadd.f32 %v2564_v63, %v2476_v24  ;;  %v2919_v41 = vpop.f32.mrf.mxu2  ;;  %v4197_v63 = vunpack.c.h.bf16 %v4349_v47 }
 0x41e   : > { %4258 = vst [vmem:[%s5668_s19] sm:$0xff] %v4257_v20   ;;  %v2920_v60 = vadd.f32 %v5652_v55, %v2919_v41 }
 0x41f   : > { %v2656_v61 = vrot.slane %v2565_v56, 1 }
 0x420   : > { %v3060_v43 = vadd.f32 %v4196_v18, %v2920_v60 }
 0x421   : > { %v2657_v1 = vsel %vm2624_vm1, %v2655_v40, %v2656_v61  ;;  %v2715_v32 = vsel %vm2624_vm1, %v2656_v61, 0.0 }
 0x422   : > { %v2742_v33 = vadd.f32 %v2715_v32, %v5482_v16  ;;  %v2389_v7 = vpop.f32.mrf.mxu3  ;;  %v2741_v52 = vadd.f32 %v2657_v1, %v5476_v26  ;;  %v3092_v39 = vmax.f32 %v3060_v43, 0.0 }
 0x423   : > { %v2479_v16 = vadd.f32 %v2478_v46, %v2389_v7  ;;  %v2574_v14 = vpop.f32.mrf.mxu1 }
 0x424   : > { %v2777_v58 = vadd.f32 %v5563_v5, %v2741_v52  ;;  %v2778_v30 = vadd.f32 %v5563_v5, %v2742_v33 }
 0x425   : > { %v2921_v22 = vpop.f32.mrf.mxu2  ;;  %v2568_v4 = vadd.f32 %v2567_v8, %v2479_v16 }
 0x426   : > { %v2922_v51 = vadd.f32 %v5652_v55, %v2921_v22  ;;  %v2809_v2 = vmax.f32 %v2777_v58, 0.0  ;;  %v2810_v23 = vmax.f32 %v2778_v30, 0.0  ;;  %v4351_v30 = vld [vmem:[%s4520_s22 + $0x18] sm:$0xff]  }
 0x427   : > { %v2658_v36 = vrot.slane %v2568_v4, 1 }
 0x428   : > { %v3061_v11 = vadd.f32 %v4197_v63, %v2922_v51  ;;  %v2831_v50 = vpack.c.bf16 %v2810_v23, %v2809_v2  ;;  %v4204_v23 = vunpack.c.l.bf16 %v4351_v30 }
 0x42a   : > { %v3093_v26 = vmax.f32 %v3061_v11, 0.0  ;;  %v2391_v44 = vpop.f32.mrf.mxu3  ;;  %2963 = vmatmul.bf16.gmra.mxu2 %v2831_v50  ;;  %v4205_v11 = vunpack.c.h.bf16 %v4351_v30 }
 0x42b   : > { %v2481_v62 = vadd.f32 %v2480_v3, %v2391_v44  ;;  %v2577_v60 = vpop.f32.mrf.mxu1 }
 0x42c   : > { %v4262_v28 = vpack.c.bf16 %v3093_v26, %v3092_v39 }
 0x42d   : > { %v2570_v34 = vadd.f32 %v2569_v45, %v2481_v62  ;;  %v2924_v15 = vpop.f32.mrf.mxu2 }
 0x42e   : > { %4364 = vst [vmem:[%s5668_s19 + $0x8] sm:$0xff] %v4262_v28   ;;  %v2925_v0 = vadd.f32 %v5652_v55, %v2924_v15 }
 0x42f   : > { %v2659_v57 = vrot.slane %v2570_v34, 1 }
 0x430   : > { %v3062_v24 = vadd.f32 %v4200_v17, %v2925_v0 }
 0x431   : > { %v2660_v46 = vsel %vm2624_vm1, %v2658_v36, %v2659_v57  ;;  %v2716_v38 = vsel %vm2624_vm1, %v2659_v57, 0.0 }
 0x432   : > { %v2744_v13 = vadd.f32 %v2716_v38, %v5493_v54  ;;  %v2394_v8 = vpop.f32.mrf.mxu3  ;;  %v2743_v3 = vadd.f32 %v2660_v46, %v5489_v37  ;;  %v2488_v54 = vpop.f32.mrf.mxu0  ;;  %v3094_v47 = vmax.f32 %v3062_v24, 0.0 }
 0x433   : > { %v2484_v45 = vadd.f32 %v2483_v6, %v2394_v8  ;;  %v2579_v44 = vpop.f32.mrf.mxu1 }
 0x434   : > { %v2779_v9 = vadd.f32 %v5563_v5, %v2743_v3  ;;  %v2780_v19 = vadd.f32 %v5563_v5, %v2744_v13  ;;  %v4352_v3 = vld [vmem:[%s4520_s22 + $0x20] sm:$0xff]  }
 0x435   : > { %v2926_v31 = vpop.f32.mrf.mxu2  ;;  %v2573_v32 = vadd.f32 %v2572_v49, %v2484_v45  ;;  %v4209_v45 = vunpack.c.h.bf16 %v4352_v3 }
 0x436   : > { %v2927_v20 = vadd.f32 %v5652_v55, %v2926_v31  ;;  %v2811_v56 = vmax.f32 %v2779_v9, 0.0  ;;  %v2812_v41 = vmax.f32 %v2780_v19, 0.0 }
 0x437   : > { %v2661_v63 = vrot.slane %v2573_v32, 1 }
 0x438   : > { %v3063_v40 = vadd.f32 %v4201_v25, %v2927_v20  ;;  %v2832_v61 = vpack.c.bf16 %v2812_v41, %v2811_v56  ;;  %v4208_v20 = vunpack.c.l.bf16 %v4352_v3 }
 0x43a   : > { %v3095_v1 = vmax.f32 %v3063_v40, 0.0  ;;  %v2396_v37 = vpop.f32.mrf.mxu3  ;;  %2968 = vmatmul.bf16.gmra.mxu2 %v2832_v61  ;;  %v2490_v43 = vpop.f32.mrf.mxu0 }
 0x43b   : > { %v2486_v33 = vadd.f32 %v2485_v53, %v2396_v37  ;;  %v2582_v25 = vpop.f32.mrf.mxu1 }
 0x43c   : > { %v4267_v18 = vpack.c.bf16 %v3095_v1, %v3094_v47 }
 0x43d   : > { %v2575_v7 = vadd.f32 %v2574_v14, %v2486_v33  ;;  %v2929_v52 = vpop.f32.mrf.mxu2 }
 0x43e   : > { %4365 = vst [vmem:[%s5668_s19 + $0x10] sm:$0xff] %v4267_v18   ;;  %v2930_v2 = vadd.f32 %v5652_v55, %v2929_v52 }
 0x43f   : > { %v2662_v58 = vrot.slane %v2575_v7, 1 }
 0x440   : > { %v3064_v4 = vadd.f32 %v4204_v23, %v2930_v2  ;;  %v4353_v23 = vld [vmem:[%s4520_s22 + $0x28] sm:$0xff]  }
 0x441   : > { %v2663_v6 = vsel %vm2624_vm1, %v2661_v63, %v2662_v58  ;;  %v2717_v22 = vsel %vm2624_vm1, %v2662_v58, 0.0 }
 0x442   : > { %v2746_v51 = vadd.f32 %v2717_v22, %v5511_v59  ;;  %v2399_v16 = vpop.f32.mrf.mxu3  ;;  %v2745_v49 = vadd.f32 %v2663_v6, %v5505_v48  ;;  %v3096_v36 = vmax.f32 %v3064_v4, 0.0  ;;  %v2493_v38 = vpop.f32.mrf.mxu0 }
 0x443   : > { %v2489_v59 = vadd.f32 %v2488_v54, %v2399_v16  ;;  %v2584_v7 = vpop.f32.mrf.mxu1 }
 0x444   : > { %v2781_v50 = vadd.f32 %v5563_v5, %v2745_v49  ;;  %v2782_v39 = vadd.f32 %v5563_v5, %v2746_v51 }
 0x445   : > { %v2931_v26 = vpop.f32.mrf.mxu2  ;;  %v2578_v42 = vadd.f32 %v2577_v60, %v2489_v59 }
 0x446   : > { %v2932_v62 = vadd.f32 %v5652_v55, %v2931_v26  ;;  %v2813_v28 = vmax.f32 %v2781_v50, 0.0  ;;  %v2814_v34 = vmax.f32 %v2782_v39, 0.0 }
 0x447   : > { %v2664_v17 = vrot.slane %v2578_v42, 1 }
 0x448   : > { %v3065_v15 = vadd.f32 %v4205_v11, %v2932_v62  ;;  %v2833_v53 = vpack.c.bf16 %v2814_v34, %v2813_v28  ;;  %v4213_v28 = vunpack.c.h.bf16 %v4353_v23 }
 0x44a   : > { %v3097_v57 = vmax.f32 %v3065_v15, 0.0  ;;  %v2401_v48 = vpop.f32.mrf.mxu3  ;;  %2973 = vmatmul.bf16.gmra.mxu2 %v2833_v53  ;;  %v2495_v47 = vpop.f32.mrf.mxu0 }
 0x44b   : > { %v2491_v46 = vadd.f32 %v2490_v43, %v2401_v48  ;;  %v2587_v39 = vpop.f32.mrf.mxu1 }
 0x44c   : > { %v4272_v14 = vpack.c.bf16 %v3097_v57, %v3096_v36 }
 0x44d   : > { %v2580_v13 = vadd.f32 %v2579_v44, %v2491_v46  ;;  %v2934_v0 = vpop.f32.mrf.mxu2  ;;  %v4212_v44 = vunpack.c.l.bf16 %v4353_v23 }
 0x44e   : > { %4366 = vst [vmem:[%s5668_s19 + $0x18] sm:$0xff] %v4272_v14   ;;  %v2935_v24 = vadd.f32 %v5652_v55, %v2934_v0 }
 0x44f   : > { %v2665_v8 = vrot.slane %v2580_v13, 1 }
 0x450   : > { %v3066_v1 = vadd.f32 %v4208_v20, %v2935_v24  ;;  %v4354_v24 = vld [vmem:[%s4520_s22 + $0x30] sm:$0xff]  }
 0x451   : > { %v2666_v9 = vsel %vm2624_vm1, %v2664_v17, %v2665_v8  ;;  %v2718_v19 = vsel %vm2624_vm1, %v2665_v8, 0.0 }
 0x452   : > { %v2748_v31 = vadd.f32 %v2718_v19, %v5526_v35  ;;  %v2404_v56 = vpop.f32.mrf.mxu3  ;;  %v2747_v41 = vadd.f32 %v2666_v9, %v5520_v21  ;;  %v3098_v52 = vmax.f32 %v3066_v1, 0.0  ;;  %v2498_v16 = vpop.f32.mrf.mxu0 }
 0x453   : > { %v2494_v35 = vadd.f32 %v2493_v38, %v2404_v56  ;;  %v2589_v8 = vpop.f32.mrf.mxu1 }
 0x454   : > { %v2783_v54 = vadd.f32 %v5563_v5, %v2747_v41  ;;  %v2784_v40 = vadd.f32 %v5563_v5, %v2748_v31 }
 0x455   : > { %v2936_v61 = vpop.f32.mrf.mxu2  ;;  %v2583_v58 = vadd.f32 %v2582_v25, %v2494_v35 }
 0x456   : > { %v2937_v37 = vadd.f32 %v5652_v55, %v2936_v61  ;;  %v2815_v32 = vmax.f32 %v2783_v54, 0.0  ;;  %v2816_v33 = vmax.f32 %v2784_v40, 0.0  ;;  %v4216_v54 = vunpack.c.l.bf16 %v4354_v24 }
 0x457   : > { %v2667_v51 = vrot.slane %v2583_v58, 1  ;;  %v4217_v61 = vunpack.c.h.bf16 %v4354_v24 }
 0x458   : > { %v3067_v60 = vadd.f32 %v4209_v45, %v2937_v37  ;;  %v2834_v18 = vpack.c.bf16 %v2816_v33, %v2815_v32 }
 0x45a   : > { %v3099_v21 = vmax.f32 %v3067_v60, 0.0  ;;  %v2406_v63 = vpop.f32.mrf.mxu3  ;;  %2978 = vmatmul.bf16.gmra.mxu2 %v2834_v18  ;;  %v2500_v38 = vpop.f32.mrf.mxu0 }
 0x45b   : > { %v2496_v30 = vadd.f32 %v2495_v47, %v2406_v63  ;;  %v4355_v63 = vld [vmem:[%s4520_s22 + $0x38] sm:$0xff]  }
 0x45c   : > { %v4277_v6 = vpack.c.bf16 %v3099_v21, %v3098_v52 }
 0x45d   : > { %v2585_v22 = vadd.f32 %v2584_v7, %v2496_v30  ;;  %v2939_v43 = vpop.f32.mrf.mxu2  ;;  %v4221_v30 = vunpack.c.h.bf16 %v4355_v63 }
 0x45e   : > { %4367 = vst [vmem:[%s5668_s19 + $0x20] sm:$0xff] %v4277_v6   ;;  %v2940_v26 = vadd.f32 %v5652_v55, %v2939_v43 }
 0x45f   : > { %v2668_v2 = vrot.slane %v2585_v22, 1 }
 0x460   : > { %v3068_v53 = vadd.f32 %v4212_v44, %v2940_v26 }
 0x461   : > { %v2669_v49 = vsel %vm2624_vm1, %v2667_v51, %v2668_v2  ;;  %v2719_v11 = vsel %vm2624_vm1, %v2668_v2, 0.0 }
 0x462   : > { %v2750_v50 = vadd.f32 %v2719_v11, %v5542_v10  ;;  %v2409_v4 = vpop.f32.mrf.mxu3  ;;  %v2749_v62 = vadd.f32 %v2669_v49, %v5536_v12  ;;  %v3100_v14 = vmax.f32 %v3068_v53, 0.0  ;;  %v4356_v11 = vld [vmem:[%s4520_s22 + $0x40] sm:$0xff]  }
 0x463   : > { %v2499_v10 = vadd.f32 %v2498_v16, %v2409_v4  ;;  %v4225_v26 = vunpack.c.h.bf16 %v4356_v11 }
 0x464   : > { %v2785_v34 = vadd.f32 %v5563_v5, %v2749_v62  ;;  %v2786_v59 = vadd.f32 %v5563_v5, %v2750_v50 }
 0x465   : > { %v2941_v15 = vpop.f32.mrf.mxu2  ;;  %v2588_v0 = vadd.f32 %v2587_v39, %v2499_v10  ;;  %v4224_v39 = vunpack.c.l.bf16 %v4356_v11 }
 0x466   : > { %v2942_v36 = vadd.f32 %v5652_v55, %v2941_v15  ;;  %v2817_v57 = vmax.f32 %v2785_v34, 0.0  ;;  %v2818_v48 = vmax.f32 %v2786_v59, 0.0 }
 0x467   : > { %v2670_v19 = vrot.slane %v2588_v0, 1 }
 0x468   : > { %v3069_v42 = vadd.f32 %v4213_v28, %v2942_v36  ;;  %v2835_v46 = vpack.c.bf16 %v2818_v48, %v2817_v57  ;;  %v4357_v36 = vld [vmem:[%s4520_s22 + $0x48] sm:$0xff]  }
 0x469   : > { %v4228_v48 = vunpack.c.l.bf16 %v4357_v36  ;;  %v4229_v10 = vunpack.c.h.bf16 %v4357_v36 }
 0x46a   : > { %v3101_v13 = vmax.f32 %v3069_v42, 0.0  ;;  %v2411_v12 = vpop.f32.mrf.mxu3  ;;  %2983 = vmatmul.bf16.gmra.mxu2 %v2835_v46 }
 0x46b   : > { %v2501_v17 = vadd.f32 %v2500_v38, %v2411_v12 }
 0x46c   : > { %v4282_v3 = vpack.c.bf16 %v3101_v13, %v3100_v14 }
 0x46d   : > { %v2590_v25 = vadd.f32 %v2589_v8, %v2501_v17  ;;  %v2944_v9 = vpop.f32.mrf.mxu2  ;;  %v4358_v8 = vld [vmem:[%s4520_s22 + $0x50] sm:$0xff]  }
 0x46e   : > { %4368 = vst [vmem:[%s5668_s19 + $0x28] sm:$0xff] %v4282_v3   ;;  %v2945_v45 = vadd.f32 %v5652_v55, %v2944_v9  ;;  %v4233_v9 = vunpack.c.h.bf16 %v4358_v8 }
 0x46f   : > { %v2671_v31 = vrot.slane %v2590_v25, 1  ;;  %v4232_v25 = vunpack.c.l.bf16 %v4358_v8 }
 0x470   : > { %v3070_v32 = vadd.f32 %v4216_v54, %v2945_v45 }
 0x471   : > { %v2672_v20 = vsel %vm2624_vm1, %v2670_v19, %v2671_v31  ;;  %v2720_v56 = vsel %vm2624_vm1, %v2671_v31, 0.0 }
 0x472   : > { %v2752_v41 = vadd.f32 %v2720_v56, %v5555_v27  ;;  %v2751_v40 = vadd.f32 %v2672_v20, %v5551_v29  ;;  %v3102_v7 = vmax.f32 %v3070_v32, 0.0 }
 0x474   : > { %v2787_v47 = vadd.f32 %v5563_v5, %v2751_v40  ;;  %v2788_v1 = vadd.f32 %v5563_v5, %v2752_v41  ;;  %v4220_v5 = vunpack.c.l.bf16 %v4355_v63  ;;  %v4359_v40 = vld [vmem:[%s4520_s22 + $0x58] sm:$0xff]  }
 0x475   : > { %v2946_v37 = vpop.f32.mrf.mxu2 }
 0x476   : > { %v2947_v33 = vadd.f32 %v5652_v55, %v2946_v37  ;;  %v2819_v35 = vmax.f32 %v2787_v47, 0.0  ;;  %v2820_v60 = vmax.f32 %v2788_v1, 0.0  ;;  %v4236_v47 = vunpack.c.l.bf16 %v4359_v40 }
 0x477   : > { %v4237_v1 = vunpack.c.h.bf16 %v4359_v40 }
 0x478   : > { %v3071_v18 = vadd.f32 %v4217_v61, %v2947_v33  ;;  %v2836_v27 = vpack.c.bf16 %v2820_v60, %v2819_v35 }
 0x47a   : > { %v3103_v52 = vmax.f32 %v3071_v18, 0.0  ;;  %2988 = vmatmul.bf16.gmra.mxu2 %v2836_v27 }
 0x47c   : > { %v4287_v29 = vpack.c.bf16 %v3103_v52, %v3102_v7  ;;  %v4360_v52 = vld [vmem:[%s4520_s22 + $0x60] sm:$0xff]  }
 0x47d   : > { %v2949_v21 = vpop.f32.mrf.mxu2  ;;  %v4241_v63 = vunpack.c.h.bf16 %v4360_v52 }
 0x47e   : > { %4369 = vst [vmem:[%s5668_s19 + $0x30] sm:$0xff] %v4287_v29   ;;  %v2950_v58 = vadd.f32 %v5652_v55, %v2949_v21  ;;  %v4240_v21 = vunpack.c.l.bf16 %v4360_v52 }
 0x480   : > { %v3072_v22 = vadd.f32 %v4220_v5, %v2950_v58 }
 0x482   : > { %v3104_v2 = vmax.f32 %v3072_v22, 0.0 }
 0x485   : > { %v2951_v6 = vpop.f32.mrf.mxu2 }
 0x486   : > { %v2952_v43 = vadd.f32 %v5652_v55, %v2951_v6 }
 0x488   : > { %v3073_v51 = vadd.f32 %v4221_v30, %v2952_v43 }
 0x48a   : > { %v3105_v23 = vmax.f32 %v3073_v51, 0.0 }
 0x48c   : > { %v4292_v16 = vpack.c.bf16 %v3105_v23, %v3104_v2  ;;  %v4361_v23 = vld [vmem:[%s4520_s22 + $0x68] sm:$0xff]  }
 0x48d   : > { %v2954_v49 = vpop.f32.mrf.mxu2  ;;  %v4245_v11 = vunpack.c.h.bf16 %v4361_v23 }
 0x48e   : > { %4370 = vst [vmem:[%s5668_s19 + $0x38] sm:$0xff] %v4292_v16   ;;  %v2955_v50 = vadd.f32 %v5652_v55, %v2954_v49  ;;  %v4244_v49 = vunpack.c.l.bf16 %v4361_v23 }
 0x490   : > { %v3074_v4 = vadd.f32 %v4224_v39, %v2955_v50 }
 0x492   : > { %v3106_v34 = vmax.f32 %v3074_v4, 0.0 }
 0x495   : > { %v2956_v44 = vpop.f32.mrf.mxu2 }
 0x496   : > { %v2957_v62 = vadd.f32 %v5652_v55, %v2956_v44 }
 0x498   : > { %v3075_v28 = vadd.f32 %v4225_v26, %v2957_v62 }
 0x49a   : > { %v3107_v59 = vmax.f32 %v3075_v28, 0.0 }
 0x49c   : > { %v4297_v15 = vpack.c.bf16 %v3107_v59, %v3106_v34  ;;  %v4362_v59 = vld [vmem:[%s4520_s22 + $0x70] sm:$0xff]  }
 0x49d   : > { %v2959_v53 = vpop.f32.mrf.mxu2  ;;  %v4249_v36 = vunpack.c.h.bf16 %v4362_v59 }
 0x49e   : > { %4371 = vst [vmem:[%s5668_s19 + $0x40] sm:$0xff] %v4297_v15   ;;  %v2960_v57 = vadd.f32 %v5652_v55, %v2959_v53  ;;  %v4248_v53 = vunpack.c.l.bf16 %v4362_v59 }
 0x4a0   : > { %v3076_v46 = vadd.f32 %v4228_v48, %v2960_v57 }
 0x4a2   : > { %v3108_v13 = vmax.f32 %v3076_v46, 0.0 }
 0x4a5   : > { %v2961_v42 = vpop.f32.mrf.mxu2 }
 0x4a6   : > { %v2962_v38 = vadd.f32 %v5652_v55, %v2961_v42 }
 0x4a8   : > { %v3077_v14 = vadd.f32 %v4229_v10, %v2962_v38 }
 0x4aa   : > { %v3109_v12 = vmax.f32 %v3077_v14, 0.0 }
 0x4ac   : > { %v4302_v0 = vpack.c.bf16 %v3109_v12, %v3108_v13  ;;  %v4363_v12 = vld [vmem:[%s4520_s22 + $0x78] sm:$0xff]  }
 0x4ad   : > { %v2964_v17 = vpop.f32.mrf.mxu2  ;;  %v4253_v8 = vunpack.c.h.bf16 %v4363_v12 }
 0x4ae   : > { %4372 = vst [vmem:[%s5668_s19 + $0x48] sm:$0xff] %v4302_v0   ;;  %v2965_v3 = vadd.f32 %v5652_v55, %v2964_v17  ;;  %v4252_v17 = vunpack.c.l.bf16 %v4363_v12 }
 0x4b0   : > { %v3078_v31 = vadd.f32 %v4232_v25, %v2965_v3 }
 0x4b2   : > { %v3110_v56 = vmax.f32 %v3078_v31, 0.0 }
 0x4b5   : > { %v2966_v19 = vpop.f32.mrf.mxu2 }
 0x4b6   : > { %v2967_v24 = vadd.f32 %v5652_v55, %v2966_v19 }
 0x4b8   : > { %v3079_v20 = vadd.f32 %v4233_v9, %v2967_v24 }
 0x4ba   : > { %v3111_v41 = vmax.f32 %v3079_v20, 0.0 }
 0x4bc   : > { %v4307_v45 = vpack.c.bf16 %v3111_v41, %v3110_v56 }
 0x4bd   : > { %v2969_v54 = vpop.f32.mrf.mxu2 }
 0x4be   : > { %4373 = vst [vmem:[%s5668_s19 + $0x50] sm:$0xff] %v4307_v45   ;;  %v2970_v61 = vadd.f32 %v5652_v55, %v2969_v54 }
 0x4c0   : > { %v3080_v32 = vadd.f32 %v4236_v47, %v2970_v61 }
 0x4c2   : > { %v3112_v60 = vmax.f32 %v3080_v32, 0.0 }
 0x4c5   : > { %v2971_v37 = vpop.f32.mrf.mxu2 }
 0x4c6   : > { %v2972_v33 = vadd.f32 %v5652_v55, %v2971_v37 }
 0x4c8   : > { %v3081_v35 = vadd.f32 %v4237_v1, %v2972_v33 }
 0x4ca   : > { %v3113_v18 = vmax.f32 %v3081_v35, 0.0 }
 0x4cc   : > { %v4312_v27 = vpack.c.bf16 %v3113_v18, %v3112_v60 }
 0x4cd   : > { %v2974_v7 = vpop.f32.mrf.mxu2 }
 0x4ce   : > { %4374 = vst [vmem:[%s5668_s19 + $0x58] sm:$0xff] %v4312_v27   ;;  %v2975_v29 = vadd.f32 %v5652_v55, %v2974_v7 }
 0x4d0   : > { %v3082_v5 = vadd.f32 %v4240_v21, %v2975_v29 }
 0x4d2   : > { %v3114_v22 = vmax.f32 %v3082_v5, 0.0 }
 0x4d5   : > { %v2976_v58 = vpop.f32.mrf.mxu2 }
 0x4d6   : > { %v2977_v30 = vadd.f32 %v5652_v55, %v2976_v58 }
 0x4d8   : > { %v3083_v6 = vadd.f32 %v4241_v63, %v2977_v30 }
 0x4da   : > { %v3115_v43 = vmax.f32 %v3083_v6, 0.0 }
 0x4dc   : > { %v4317_v51 = vpack.c.bf16 %v3115_v43, %v3114_v22 }
 0x4dd   : > { %v2979_v2 = vpop.f32.mrf.mxu2 }
 0x4de   : > { %4375 = vst [vmem:[%s5668_s19 + $0x60] sm:$0xff] %v4317_v51   ;;  %v2980_v16 = vadd.f32 %v5652_v55, %v2979_v2 }
 0x4e0   : > { %v3084_v39 = vadd.f32 %v4244_v49, %v2980_v16 }
 0x4e2   : > { %v3116_v4 = vmax.f32 %v3084_v39, 0.0 }
 0x4e5   : > { %v2981_v50 = vpop.f32.mrf.mxu2 }
 0x4e6   : > { %v2982_v26 = vadd.f32 %v5652_v55, %v2981_v50 }
 0x4e8   : > { %v3085_v44 = vadd.f32 %v4245_v11, %v2982_v26 }
 0x4ea   : > { %v3117_v62 = vmax.f32 %v3085_v44, 0.0 }
 0x4ec   : > { %v4322_v28 = vpack.c.bf16 %v3117_v62, %v3116_v4 }
 0x4ed   : > { %v2984_v34 = vpop.f32.mrf.mxu2 }
 0x4ee   : > { %4376 = vst [vmem:[%s5668_s19 + $0x68] sm:$0xff] %v4322_v28   ;;  %v2985_v15 = vadd.f32 %v5652_v55, %v2984_v34 }
 0x4f0   : > { %v3086_v48 = vadd.f32 %v4248_v53, %v2985_v15 }
 0x4f2   : > { %v3118_v46 = vmax.f32 %v3086_v48, 0.0 }
 0x4f5   : > { %v2986_v57 = vpop.f32.mrf.mxu2 }
 0x4f6   : > { %v2987_v10 = vadd.f32 %v5652_v55, %v2986_v57 }
 0x4f8   : > { %v3087_v42 = vadd.f32 %v4249_v36, %v2987_v10 }
 0x4fa   : > { %v3119_v38 = vmax.f32 %v3087_v42, 0.0 }
 0x4fc   : > { %v4327_v14 = vpack.c.bf16 %v3119_v38, %v3118_v46 }
 0x4fd   : > { %v2989_v13 = vpop.f32.mrf.mxu2 }
 0x4fe   : > { %4377 = vst [vmem:[%s5668_s19 + $0x70] sm:$0xff] %v4327_v14   ;;  %v2990_v0 = vadd.f32 %v5652_v55, %v2989_v13 }
 0x500   : > { %v3088_v25 = vadd.f32 %v4252_v17, %v2990_v0 }
 0x502   : > { %v3120_v31 = vmax.f32 %v3088_v25, 0.0 }
 0x505   : > { %v2991_v3 = vpop.f32.mrf.mxu2 }
 0x506   : > { %v2992_v9 = vadd.f32 %v5652_v55, %v2991_v3 }
 0x508   : > { %v3089_v19 = vadd.f32 %v4253_v8, %v2992_v9 }
 0x50a   : > { %v3121_v24 = vmax.f32 %v3089_v19, 0.0 }
 0x50c   : > { %v4332_v20 = vpack.c.bf16 %v3121_v24, %v3120_v31 }
 0x50e   : > { %4378 = vst [vmem:[%s5668_s19 + $0x78] sm:$0xff] %v4332_v20  }
 0x50f PF: > { %s17_s24 = sadd.s32 1, %s4437_s24  }
 0x510   : > { %p14_p4 = scmp.ge.s32.totalorder %s17_s24, 4  }
 0x512   :  { %16 = sbr.rel (!%p14_p4) target bundleno = 1 (0x1), region = 83 }

</bundles_post_ra>
